<compile_context>
chip_gen: v7x
topology: tpu7x:2x2x1
jax: 0.10.0
libtpu: 0.0.40
codegen_flags: <defaults>
</compile_context>

<pallas_src>
import jax
import jax.numpy as jnp
from jax import lax
from jax.experimental import pallas as pl
from jax.experimental.pallas import tpu as pltpu

HIDDEN = 800          # fixed by the module definition
HIDDEN_PAD = 896      # padded to a multiple of 128 lanes
LANE = 128
BN_EPS = 1e-5


def _round_up(x, m):
    return (x + m - 1) // m * m


def _encoder_kernel(x_ref,
                    w1_ref, b1_ref, g1_ref, be1_ref,
                    w2_ref, b2_ref, g2_ref, be2_ref,
                    w3_ref, b3_ref,
                    o_ref):
    """Whole MLP (3 matmuls + 2 batchnorms + 2 ReLUs) in one VMEM-resident block."""
    x = x_ref[...].astype(jnp.float32)
    inv_b = jnp.float32(1.0 / x_ref.shape[0])

    def linear(h, w_ref, b_ref):
        # Weights arrive as bf16 (DMA win); compute/accumulate in f32.
        w = w_ref[...].astype(jnp.float32)
        return jnp.dot(h, w, preferred_element_type=jnp.float32) + b_ref[...]

    def batchnorm_relu(h, g_ref, be_ref):
        # Training-mode BatchNorm1d (biased variance), one-pass statistics:
        # mean = E[h], var = E[h^2] - mean^2 from a single read of h.
        s = jnp.sum(h, axis=0, keepdims=True)
        sq = jnp.sum(h * h, axis=0, keepdims=True)
        mean = s * inv_b
        var = jnp.maximum(sq * inv_b - mean * mean, 0.0)
        scale = g_ref[...] * lax.rsqrt(var + BN_EPS)   # rsqrt -> EUP slot
        return jnp.maximum((h - mean) * scale + be_ref[...], 0.0)  # ReLU

    h = batchnorm_relu(linear(x, w1_ref, b1_ref), g1_ref, be1_ref)
    h = batchnorm_relu(linear(h, w2_ref, b2_ref), g2_ref, be2_ref)
    o_ref[...] = linear(h, w3_ref, b3_ref).astype(o_ref.dtype)


def init_params(key, dim_in, dim_out):
    """PyTorch-style uniform(+-1/sqrt(fan_in)) init on the real shapes, then
    zero-padded to lane-dense shapes.  Weights -> bf16 (halves the weight DMA);
    bias / gamma / beta stay f32 (tiny, keeps numerics tight).
    NOTE: the lane-padding of gamma must be 0 (not 1) so padded features stay 0."""
    out_pad = _round_up(max(2 * dim_out, LANE), LANE)
    ks = jax.random.split(key, 6)

    def lin(kw, kb, fin, fout, fin_pad, fout_pad):
        bound = 1.0 / float(fin) ** 0.5
        w = jax.random.uniform(kw, (fin, fout), jnp.float32, -bound, bound)
        b = jax.random.uniform(kb, (1, fout), jnp.float32, -bound, bound)
        w = jnp.zeros((fin_pad, fout_pad), jnp.float32).at[:fin, :fout].set(w)
        b = jnp.zeros((1, fout_pad), jnp.float32).at[:, :fout].set(b)
        return w.astype(jnp.bfloat16), b

    w1, b1 = lin(ks[0], ks[1], dim_in, HIDDEN, dim_in, HIDDEN_PAD)
    w2, b2 = lin(ks[2], ks[3], HIDDEN, HIDDEN, HIDDEN_PAD, HIDDEN_PAD)
    w3, b3 = lin(ks[4], ks[5], HIDDEN, 2 * dim_out, HIDDEN_PAD, out_pad)

    def bn():
        g = jnp.zeros((1, HIDDEN_PAD), jnp.float32).at[:, :HIDDEN].set(1.0)
        be = jnp.zeros((1, HIDDEN_PAD), jnp.float32)
        return g, be

    g1, be1 = bn()
    g2, be2 = bn()
    return (w1, b1, g1, be1, w2, b2, g2, be2, w3, b3)


def pendulum_encoder(x, params, dim_out):
    """Returns (mu, logvar): the two halves of the final (B, 2*dim_out) output."""
    # TODO(synk): for large batch, switch to a gridded two-pass-BN design (tile the
    # batch, accumulate per-feature sum/sumsq across tiles) instead of this single
    # VMEM-resident block; training-mode BN needs full-batch statistics.
    batch = x.shape[0]
    out_pad = params[-1].shape[1]  # padded 2*dim_out (>= 128, lane-dense)

    vmem = pl.BlockSpec(memory_space=pltpu.MemorySpace.VMEM)
    out = pl.pallas_call(
        _encoder_kernel,
        out_shape=jax.ShapeDtypeStruct((batch, out_pad), x.dtype),
        in_specs=[vmem] * (1 + len(params)),
        out_specs=vmem,
    )(x, *params)

    # chunk(2, dim=1) on the real (unpadded) columns — pure glue in plain JAX.
    return out[:, :dim_out], out[:, dim_out:2 * dim_out]


def pendulum_encoder_ref(x, params, dim_out):
    """Pure-JAX reference (same bf16-quantized weights, f32 math)."""
    (w1, b1, g1, be1, w2, b2, g2, be2, w3, b3) = params

    def lin(h, w, b):
        return jnp.dot(h, w.astype(jnp.float32),
                       precision=lax.Precision.HIGHEST) + b

    def bn_relu(h, g, be):
        m = h.mean(0, keepdims=True)
        v = ((h - m) ** 2).mean(0, keepdims=True)
        return jnp.maximum((h - m) / jnp.sqrt(v + BN_EPS) * g + be, 0.0)

    h = bn_relu(lin(x, w1, b1), g1, be1)
    h = bn_relu(lin(h, w2, b2), g2, be2)
    out = lin(h, w3, b3)
    return out[:, :dim_out], out[:, dim_out:2 * dim_out]


if __name__ == "__main__":
    batch, dim_in, dim_out = 8, 32, 4

    key = jax.random.PRNGKey(0)
    kx, kp = jax.random.split(key)
    x = jax.random.normal(kx, (batch, dim_in), jnp.float32)
    params = init_params(kp, dim_in, dim_out)

    mu, logvar = pendulum_encoder(x, params, dim_out)
    jax.block_until_ready((mu, logvar))

    mu_ref, logvar_ref = pendulum_encoder_ref(x, params, dim_out)
    assert mu.shape == (batch, dim_out) and logvar.shape == (batch, dim_out)
    assert jnp.allclose(mu, mu_ref, atol=1e-3, rtol=1e-3)
    assert jnp.allclose(logvar, logvar_ref, atol=1e-3, rtol=1e-3)

    print("KERNEL_OK")
</pallas_src>

<mosaic_0001>
module attributes {stable_mosaic.version = 11 : i64} {
  func.func @_encoder_kernel(%arg0: memref<8x32xf32, #tpu.memory_space<vmem>>, %arg1: memref<32x896xbf16, #tpu.memory_space<vmem>>, %arg2: memref<1x896xf32, #tpu.memory_space<vmem>>, %arg3: memref<1x896xf32, #tpu.memory_space<vmem>>, %arg4: memref<1x896xf32, #tpu.memory_space<vmem>>, %arg5: memref<896x896xbf16, #tpu.memory_space<vmem>>, %arg6: memref<1x896xf32, #tpu.memory_space<vmem>>, %arg7: memref<1x896xf32, #tpu.memory_space<vmem>>, %arg8: memref<1x896xf32, #tpu.memory_space<vmem>>, %arg9: memref<896x128xbf16, #tpu.memory_space<vmem>>, %arg10: memref<1x128xf32, #tpu.memory_space<vmem>>, %arg11: memref<8x128xf32, #tpu.memory_space<vmem>>) attributes {dimension_semantics = [], scalar_prefetch = 0 : i64, scratch_operands = 0 : i64, tpu.core_type = #tpu.core_type<tc>} {
    %c0 = arith.constant 0 : index
    %c0_0 = arith.constant 0 : index
    %0 = vector.load %arg0[%c0, %c0_0] : memref<8x32xf32, #tpu.memory_space<vmem>>, vector<8x32xf32>
    %c0_1 = arith.constant 0 : index
    %c0_2 = arith.constant 0 : index
    %1 = vector.load %arg1[%c0_1, %c0_2] : memref<32x896xbf16, #tpu.memory_space<vmem>>, vector<32x896xbf16>
    %2 = arith.extf %1 : vector<32x896xbf16> to vector<32x896xf32>
    %cst = arith.constant dense<0.000000e+00> : vector<8x896xf32>
    %3 = tpu.matmul %0, %2, %cst {dimension_numbers = #tpu.dot_dimension_numbers<[1], [0], [0], [1], [0, 0, 1, 1], [], []>} : vector<8x32xf32>, vector<32x896xf32>, vector<8x896xf32> -> vector<8x896xf32>
    %c0_3 = arith.constant 0 : index
    %c0_4 = arith.constant 0 : index
    %4 = vector.load %arg2[%c0_3, %c0_4] : memref<1x896xf32, #tpu.memory_space<vmem>>, vector<1x896xf32>
    %5 = vector.broadcast %4 : vector<1x896xf32> to vector<8x896xf32>
    %6 = arith.addf %3, %5 : vector<8x896xf32>
    %cst_5 = arith.constant dense<0.000000e+00> : vector<896xf32>
    %7 = vector.multi_reduction <add>, %6, %cst_5 [0] : vector<8x896xf32> to vector<896xf32>
    %8 = vector.shape_cast %7 : vector<896xf32> to vector<1x896xf32>
    %9 = arith.mulf %6, %6 : vector<8x896xf32>
    %cst_6 = arith.constant dense<0.000000e+00> : vector<896xf32>
    %10 = vector.multi_reduction <add>, %9, %cst_6 [0] : vector<8x896xf32> to vector<896xf32>
    %11 = vector.shape_cast %10 : vector<896xf32> to vector<1x896xf32>
    %cst_7 = arith.constant 1.250000e-01 : f32
    %12 = vector.broadcast %cst_7 : f32 to vector<1x896xf32>
    %13 = arith.mulf %8, %12 : vector<1x896xf32>
    %cst_8 = arith.constant 1.250000e-01 : f32
    %14 = vector.broadcast %cst_8 : f32 to vector<1x896xf32>
    %15 = arith.mulf %11, %14 : vector<1x896xf32>
    %16 = arith.mulf %13, %13 : vector<1x896xf32>
    %17 = arith.subf %15, %16 : vector<1x896xf32>
    %cst_9 = arith.constant 0.000000e+00 : f32
    %18 = vector.broadcast %cst_9 : f32 to vector<1x896xf32>
    %19 = arith.maximumf %17, %18 : vector<1x896xf32>
    %c0_10 = arith.constant 0 : index
    %c0_11 = arith.constant 0 : index
    %20 = vector.load %arg3[%c0_10, %c0_11] : memref<1x896xf32, #tpu.memory_space<vmem>>, vector<1x896xf32>
    %cst_12 = arith.constant 9.99999974E-6 : f32
    %21 = vector.broadcast %cst_12 : f32 to vector<1x896xf32>
    %22 = arith.addf %19, %21 : vector<1x896xf32>
    %23 = math.rsqrt %22 : vector<1x896xf32>
    %24 = arith.mulf %20, %23 : vector<1x896xf32>
    %25 = vector.broadcast %13 : vector<1x896xf32> to vector<8x896xf32>
    %26 = arith.subf %6, %25 : vector<8x896xf32>
    %27 = vector.broadcast %24 : vector<1x896xf32> to vector<8x896xf32>
    %28 = arith.mulf %26, %27 : vector<8x896xf32>
    %c0_13 = arith.constant 0 : index
    %c0_14 = arith.constant 0 : index
    %29 = vector.load %arg4[%c0_13, %c0_14] : memref<1x896xf32, #tpu.memory_space<vmem>>, vector<1x896xf32>
    %30 = vector.broadcast %29 : vector<1x896xf32> to vector<8x896xf32>
    %31 = arith.addf %28, %30 : vector<8x896xf32>
    %cst_15 = arith.constant 0.000000e+00 : f32
    %32 = vector.broadcast %cst_15 : f32 to vector<8x896xf32>
    %33 = arith.maximumf %31, %32 : vector<8x896xf32>
    %c0_16 = arith.constant 0 : index
    %c0_17 = arith.constant 0 : index
    %34 = vector.load %arg5[%c0_16, %c0_17] : memref<896x896xbf16, #tpu.memory_space<vmem>>, vector<896x896xbf16>
    %35 = arith.extf %34 : vector<896x896xbf16> to vector<896x896xf32>
    %cst_18 = arith.constant dense<0.000000e+00> : vector<8x896xf32>
    %36 = tpu.matmul %33, %35, %cst_18 {dimension_numbers = #tpu.dot_dimension_numbers<[1], [0], [0], [1], [0, 0, 1, 1], [], []>} : vector<8x896xf32>, vector<896x896xf32>, vector<8x896xf32> -> vector<8x896xf32>
    %c0_19 = arith.constant 0 : index
    %c0_20 = arith.constant 0 : index
    %37 = vector.load %arg6[%c0_19, %c0_20] : memref<1x896xf32, #tpu.memory_space<vmem>>, vector<1x896xf32>
    %38 = vector.broadcast %37 : vector<1x896xf32> to vector<8x896xf32>
    %39 = arith.addf %36, %38 : vector<8x896xf32>
    %cst_21 = arith.constant dense<0.000000e+00> : vector<896xf32>
    %40 = vector.multi_reduction <add>, %39, %cst_21 [0] : vector<8x896xf32> to vector<896xf32>
    %41 = vector.shape_cast %40 : vector<896xf32> to vector<1x896xf32>
    %42 = arith.mulf %39, %39 : vector<8x896xf32>
    %cst_22 = arith.constant dense<0.000000e+00> : vector<896xf32>
    %43 = vector.multi_reduction <add>, %42, %cst_22 [0] : vector<8x896xf32> to vector<896xf32>
    %44 = vector.shape_cast %43 : vector<896xf32> to vector<1x896xf32>
    %cst_23 = arith.constant 1.250000e-01 : f32
    %45 = vector.broadcast %cst_23 : f32 to vector<1x896xf32>
    %46 = arith.mulf %41, %45 : vector<1x896xf32>
    %cst_24 = arith.constant 1.250000e-01 : f32
    %47 = vector.broadcast %cst_24 : f32 to vector<1x896xf32>
    %48 = arith.mulf %44, %47 : vector<1x896xf32>
    %49 = arith.mulf %46, %46 : vector<1x896xf32>
    %50 = arith.subf %48, %49 : vector<1x896xf32>
    %cst_25 = arith.constant 0.000000e+00 : f32
    %51 = vector.broadcast %cst_25 : f32 to vector<1x896xf32>
    %52 = arith.maximumf %50, %51 : vector<1x896xf32>
    %c0_26 = arith.constant 0 : index
    %c0_27 = arith.constant 0 : index
    %53 = vector.load %arg7[%c0_26, %c0_27] : memref<1x896xf32, #tpu.memory_space<vmem>>, vector<1x896xf32>
    %cst_28 = arith.constant 9.99999974E-6 : f32
    %54 = vector.broadcast %cst_28 : f32 to vector<1x896xf32>
    %55 = arith.addf %52, %54 : vector<1x896xf32>
    %56 = math.rsqrt %55 : vector<1x896xf32>
    %57 = arith.mulf %53, %56 : vector<1x896xf32>
    %58 = vector.broadcast %46 : vector<1x896xf32> to vector<8x896xf32>
    %59 = arith.subf %39, %58 : vector<8x896xf32>
    %60 = vector.broadcast %57 : vector<1x896xf32> to vector<8x896xf32>
    %61 = arith.mulf %59, %60 : vector<8x896xf32>
    %c0_29 = arith.constant 0 : index
    %c0_30 = arith.constant 0 : index
    %62 = vector.load %arg8[%c0_29, %c0_30] : memref<1x896xf32, #tpu.memory_space<vmem>>, vector<1x896xf32>
    %63 = vector.broadcast %62 : vector<1x896xf32> to vector<8x896xf32>
    %64 = arith.addf %61, %63 : vector<8x896xf32>
    %cst_31 = arith.constant 0.000000e+00 : f32
    %65 = vector.broadcast %cst_31 : f32 to vector<8x896xf32>
    %66 = arith.maximumf %64, %65 : vector<8x896xf32>
    %c0_32 = arith.constant 0 : index
    %c0_33 = arith.constant 0 : index
    %67 = vector.load %arg9[%c0_32, %c0_33] : memref<896x128xbf16, #tpu.memory_space<vmem>>, vector<896x128xbf16>
    %68 = arith.extf %67 : vector<896x128xbf16> to vector<896x128xf32>
    %cst_34 = arith.constant dense<0.000000e+00> : vector<8x128xf32>
    %69 = tpu.matmul %66, %68, %cst_34 {dimension_numbers = #tpu.dot_dimension_numbers<[1], [0], [0], [1], [0, 0, 1, 1], [], []>} : vector<8x896xf32>, vector<896x128xf32>, vector<8x128xf32> -> vector<8x128xf32>
    %c0_35 = arith.constant 0 : index
    %c0_36 = arith.constant 0 : index
    %70 = vector.load %arg10[%c0_35, %c0_36] : memref<1x128xf32, #tpu.memory_space<vmem>>, vector<1x128xf32>
    %71 = vector.broadcast %70 : vector<1x128xf32> to vector<8x128xf32>
    %72 = arith.addf %69, %71 : vector<8x128xf32>
    %c0_37 = arith.constant 0 : index
    %c0_38 = arith.constant 0 : index
    %73 = vector.load %arg11[%c0_37, %c0_38] : memref<8x128xf32, #tpu.memory_space<vmem>>, vector<8x128xf32>
    tpu.vector_store %arg11[%c0_37, %c0_38], %72 {strides = array<i32>} : memref<8x128xf32, #tpu.memory_space<vmem>>, vector<8x128xf32>,
    return
  }
}

</mosaic_0001>

<bundles_post_ra>
// kernel: tpu_custom_call.1
= control target key start
LH: loop header
LB: loop body
LE: loop exit
PB: predicated region body
PF: predicated region fallthrough
CT: control target
= control target key end

     0   :  { %16 = vsyncpa [#allocation3], 0  ;;  %s7563_s0 = inlined_call_operand.hbm [shape: f32[8,32], index: 0, kind: input, shape index: {}]   ;;  %s7564_s1 = inlined_call_operand.hbm [shape: bf16[32,896], index: 1, kind: input, shape index: {}]   ;;  %s7565_s2 = inlined_call_operand.hbm [shape: f32[1,896], index: 2, kind: input, shape index: {}]   ;;  %s7566_s3 = inlined_call_operand.hbm [shape: f32[1,896], index: 3, kind: input, shape index: {}]   ;;  %s7567_s4 = inlined_call_operand.hbm [shape: f32[1,896], index: 4, kind: input, shape index: {}]   ;;  %s7568_s5 = inlined_call_operand.hbm [shape: bf16[896,896], index: 5, kind: input, shape index: {}]   ;;  %s7569_s6 = inlined_call_operand.hbm [shape: f32[1,896], index: 6, kind: input, shape index: {}]   ;;  %s7570_s7 = inlined_call_operand.hbm [shape: f32[1,896], index: 7, kind: input, shape index: {}]   ;;  %s7571_s8 = inlined_call_operand.hbm [shape: f32[1,896], index: 8, kind: input, shape index: {}]   ;;  %s7572_s9 = inlined_call_operand.hbm [shape: bf16[896,128], index: 9, kind: input, shape index: {}]   ;;  %s7573_s10 = inlined_call_operand.hbm [shape: f32[1,128], index: 10, kind: input, shape index: {}]   ;;  %s7574_s11 = inlined_call_operand.hbm [shape: f32[8,128], index: 11, kind: output, shape index: {}]  }
   0x1   :  { %17 = vsyncpa [#allocation6], 0 }
   0x2   :  { %18 = vsyncpa [#allocation9], 0 }
   0x3   :  { %19 = vsyncpa [#allocation12], 0 }
   0x4   :  { %20 = vsyncpa [#allocation15], 0 }
   0x5   :  { %21 = vsyncpa [#allocation18], 0 }
   0x6   :  { %22 = vsyncpa [#allocation4], 0  ;;  %s6964_s17 = smov [#allocation5]   ;;  %s6686_s21 = scalar_lea.hbm %s7564_s1, 1792 }
   0x7   :  { %s38_s18 = sshll.u32 %s6964_s17, 4  ;;  %p6687_p0 = scmp.ne.s32.totalorder %s7564_s1, %s6686_s21  ;;  %s39_s18 = int_to_ptr.vmem [resolvable:$true] %s38_s18 }
   0x8   :  { %p6690_p1 = scmp.lt.u32.totalorder %s6686_s21, %s7564_s1 }
   0xa   :  { %p6692_p2 = pnand %p6690_p1, %p6687_p0 }
   0xc   :  { %6695 = shalt.err (!%p6692_p2)
}
   0xd   :  { %s6696_s26 = scalar_lea.vmem %s39_s18, 1792  ;;  %p6701_p4 = scmp.lt.s32.totalorder %s39_s18, %s39_s18 }
   0xe   :  { %p6697_p3 = scmp.ne.s32.totalorder %s39_s18, %s6696_s26  ;;  %p6702_p5 = scmp.lt.s32.totalorder %s6696_s26, %s6696_s26 }
  0x10   :  { %p6703_p6 = por %p6702_p5, %p6701_p4 }
  0x12   :  { %p6704_p7 = pnand %p6703_p6, %p6697_p3 }
  0x14   :  { %6707 = shalt.err (!%p6704_p7)
}
  0x15   :  { %s6965_s27 = smov 448   ;;  %s6966_s28 = smov 28  }
  0x16   :  { %44 = dma.hbm_to_vmem [thread:$0]  %s7564_s1, 1792, %s39_s18, [#allocation6], %s6965_s27, %s6965_s27, %s6966_s28  }
  0x17   :  { %s6967_s12 = smov [#allocation8]   ;;  %s6968_s14 = smov [#allocation11]  }
  0x18   :  { %s61_s13 = sshll.u32 %s6967_s12, 4  ;;  %s80_s15 = sshll.u32 %s6968_s14, 4  ;;  %s62_s13 = int_to_ptr.vmem [resolvable:$true] %s61_s13  ;;  %s81_s15 = int_to_ptr.vmem [resolvable:$true] %s80_s15 }
  0x19   :  { %s6708_s19 = scalar_lea.hbm %s7566_s3, 112 }
  0x1a   :  { %p6709_p8 = scmp.ne.s32.totalorder %s7566_s3, %s6708_s19  ;;  %p6712_p9 = scmp.lt.u32.totalorder %s6708_s19, %s7566_s3 }
  0x1c   :  { %p6714_p10 = pnand %p6712_p9, %p6709_p8 }
  0x1e   :  { %6717 = shalt.err (!%p6714_p10)
}
  0x1f   :  { %s6718_s1 = scalar_lea.vmem %s62_s13, 112  ;;  %s6722_s18 = scalar_lea.vmem %s62_s13, 128 }
  0x20   :  { %p6719_p11 = scmp.ne.s32.totalorder %s62_s13, %s6718_s1  ;;  %p6723_p12 = scmp.lt.s32.totalorder %s62_s13, %s62_s13 }
  0x21   :  { %p6724_p13 = scmp.lt.s32.totalorder %s6722_s18, %s6718_s1 }
  0x23   :  { %p6725_p0 = por %p6724_p13, %p6723_p12 }
  0x25   :  { %p6726_p1 = pnand %p6725_p0, %p6719_p11 }
  0x27   :  { %6729 = shalt.err (!%p6726_p1)
}
  0x28   :  { %64 = dma.hbm_to_vmem [thread:$0]  %s7566_s3, 112, %s62_s13, [#allocation9]  }
  0x29   :  { %s6730_s30 = scalar_lea.hbm %s7568_s5, 50176 }
  0x2a   :  { %p6731_p2 = scmp.ne.s32.totalorder %s7568_s5, %s6730_s30  ;;  %p6734_p3 = scmp.lt.u32.totalorder %s6730_s30, %s7568_s5 }
  0x2c   :  { %p6736_p4 = pnand %p6734_p3, %p6731_p2 }
  0x2e   :  { %6739 = shalt.err (!%p6736_p4)
}
  0x2f   :  { %s6740_s19 = scalar_lea.vmem %s81_s15, 50176  ;;  %p6745_p6 = scmp.lt.s32.totalorder %s81_s15, %s81_s15 }
  0x30   :  { %p6741_p5 = scmp.ne.s32.totalorder %s81_s15, %s6740_s19  ;;  %p6746_p7 = scmp.lt.s32.totalorder %s6740_s19, %s6740_s19 }
  0x32   :  { %p6747_p8 = por %p6746_p7, %p6745_p6 }
  0x34   :  { %p6748_p9 = pnand %p6747_p8, %p6741_p5 }
  0x36   :  { %6751 = shalt.err (!%p6748_p9)
}
  0x37   :  { %86 = dma.hbm_to_vmem [thread:$0]  %s7568_s5, 50176, %s81_s15, [#allocation12], %s6965_s27, %s6965_s27, %s6966_s28  }
  0x38   :  { %s6969_s20 = smov [#allocation14]   ;;  %s6970_s22 = smov [#allocation17]  }
  0x39   :  { %s103_s21 = sshll.u32 %s6969_s20, 4  ;;  %s122_s23 = sshll.u32 %s6970_s22, 4  ;;  %s104_s21 = int_to_ptr.vmem [resolvable:$true] %s103_s21  ;;  %s123_s23 = int_to_ptr.vmem [resolvable:$true] %s122_s23 }
  0x3a   :  { %s6752_s24 = scalar_lea.hbm %s7570_s7, 112 }
  0x3b   :  { %p6753_p10 = scmp.ne.s32.totalorder %s7570_s7, %s6752_s24  ;;  %p6756_p11 = scmp.lt.u32.totalorder %s6752_s24, %s7570_s7 }
  0x3d   :  { %p6758_p12 = pnand %p6756_p11, %p6753_p10 }
  0x3f   :  { %6761 = shalt.err (!%p6758_p12)
}
  0x40   :  { %s6762_s5 = scalar_lea.vmem %s104_s21, 112  ;;  %s6766_s27 = scalar_lea.vmem %s104_s21, 128 }
  0x41   :  { %p6763_p13 = scmp.ne.s32.totalorder %s104_s21, %s6762_s5  ;;  %p6767_p0 = scmp.lt.s32.totalorder %s104_s21, %s104_s21 }
  0x42   :  { %p6768_p1 = scmp.lt.s32.totalorder %s6766_s27, %s6762_s5 }
  0x44   :  { %p6769_p2 = por %p6768_p1, %p6767_p0 }
  0x46   :  { %p6770_p3 = pnand %p6769_p2, %p6763_p13 }
  0x48   :  { %6773 = shalt.err (!%p6770_p3)
}
  0x49   :  { %106 = dma.hbm_to_vmem [thread:$0]  %s7570_s7, 112, %s104_s21, [#allocation15]  }
  0x4a   :  { %s6774_s16 = scalar_lea.hbm %s7572_s9, 7168 }
  0x4b   :  { %p6775_p4 = scmp.ne.s32.totalorder %s7572_s9, %s6774_s16  ;;  %p6778_p5 = scmp.lt.u32.totalorder %s6774_s16, %s7572_s9 }
  0x4d   :  { %p6780_p6 = pnand %p6778_p5, %p6775_p4 }
  0x4f   :  { %6783 = shalt.err (!%p6780_p6)
}
  0x50   :  { %s6784_s20 = scalar_lea.vmem %s123_s23, 7168  ;;  %p6789_p8 = scmp.lt.s32.totalorder %s123_s23, %s123_s23 }
  0x51   :  { %p6785_p7 = scmp.ne.s32.totalorder %s123_s23, %s6784_s20  ;;  %p6790_p9 = scmp.lt.s32.totalorder %s6784_s20, %s6784_s20 }
  0x53   :  { %p6791_p10 = por %p6790_p9, %p6789_p8 }
  0x55   :  { %p6792_p11 = pnand %p6791_p10, %p6785_p7 }
  0x57   :  { %6795 = shalt.err (!%p6792_p11)
}
  0x58   :  { %s6971_s7 = smov 64   ;;  %s6972_s21 = smov 4  }
  0x59   :  { %128 = dma.hbm_to_vmem [thread:$0]  %s7572_s9, 7168, %s123_s23, [#allocation18], %s6971_s7, %s6971_s7, %s6972_s21  }
  0x5a   :  { %s6973_s18 = smov [#allocation2]   ;;  %s6974_s25 = smov [#allocation7]  }
  0x5b   :  { %s29_s24 = sshll.u32 %s6973_s18, 4  ;;  %s51_s26 = sshll.u32 %s6974_s25, 4  ;;  %s30_s24 = int_to_ptr.vmem [resolvable:$true] %s29_s24  ;;  %s52_s26 = int_to_ptr.vmem [resolvable:$true] %s51_s26 }
  0x5c   :  { %s6796_s5 = scalar_lea.hbm %s7563_s0, 128 }
  0x5d   :  { %p6797_p12 = scmp.ne.s32.totalorder %s7563_s0, %s6796_s5  ;;  %p6800_p13 = scmp.lt.u32.totalorder %s6796_s5, %s7563_s0 }
  0x5f   :  { %p6802_p0 = pnand %p6800_p13, %p6797_p12 }
  0x61   :  { %6805 = shalt.err (!%p6802_p0)
}
  0x62   :  { %s6806_s9 = scalar_lea.vmem %s30_s24, 128  ;;  %p6811_p2 = scmp.lt.s32.totalorder %s30_s24, %s30_s24 }
  0x63   :  { %p6807_p1 = scmp.ne.s32.totalorder %s30_s24, %s6806_s9  ;;  %p6812_p3 = scmp.lt.s32.totalorder %s6806_s9, %s6806_s9 }
  0x65   :  { %p6813_p4 = por %p6812_p3, %p6811_p2 }
  0x67   :  { %p6814_p5 = pnand %p6813_p4, %p6807_p1 }
  0x69   :  { %6817 = shalt.err (!%p6814_p5)
}
  0x6a   :  { %32 = dma.hbm_to_vmem [thread:$0]  %s7563_s0, 128, %s30_s24, [#allocation3]  }
  0x6b   :  { %s6818_s19 = scalar_lea.hbm %s7565_s2, 112 }
  0x6c   :  { %p6819_p6 = scmp.ne.s32.totalorder %s7565_s2, %s6818_s19  ;;  %p6822_p7 = scmp.lt.u32.totalorder %s6818_s19, %s7565_s2 }
  0x6e   :  { %p6824_p8 = pnand %p6822_p7, %p6819_p6 }
  0x70   :  { %6827 = shalt.err (!%p6824_p8)
}
  0x71   :  { %s6828_s21 = scalar_lea.vmem %s52_s26, 112  ;;  %s6832_s22 = scalar_lea.vmem %s52_s26, 128 }
  0x72   :  { %p6829_p9 = scmp.ne.s32.totalorder %s52_s26, %s6828_s21  ;;  %p6833_p10 = scmp.lt.s32.totalorder %s52_s26, %s52_s26 }
  0x73   :  { %p6834_p11 = scmp.lt.s32.totalorder %s6832_s22, %s6828_s21 }
  0x75   :  { %p6835_p12 = por %p6834_p11, %p6833_p10 }
  0x77   :  { %p6836_p13 = pnand %p6835_p12, %p6829_p9 }
  0x79   :  { %6839 = shalt.err (!%p6836_p13)
}
  0x7a   :  { %54 = dma.hbm_to_vmem [thread:$0]  %s7565_s2, 112, %s52_s26, [#allocation6]  }
  0x7b   :  { %s6975_s18 = smov [#allocation10]   ;;  %s6976_s25 = smov [#allocation13]  }
  0x7c   :  { %s71_s24 = sshll.u32 %s6975_s18, 4  ;;  %s93_s29 = sshll.u32 %s6976_s25, 4  ;;  %s72_s24 = int_to_ptr.vmem [resolvable:$true] %s71_s24  ;;  %s94_s29 = int_to_ptr.vmem [resolvable:$true] %s93_s29 }
  0x7d   :  { %s6840_s27 = scalar_lea.hbm %s7567_s4, 112 }
  0x7e   :  { %p6841_p0 = scmp.ne.s32.totalorder %s7567_s4, %s6840_s27  ;;  %p6844_p1 = scmp.lt.u32.totalorder %s6840_s27, %s7567_s4 }
  0x80   :  { %p6846_p2 = pnand %p6844_p1, %p6841_p0 }
  0x82   :  { %6849 = shalt.err (!%p6846_p2)
}
  0x83   :  { %s6850_s2 = scalar_lea.vmem %s72_s24, 112  ;;  %s6854_s26 = scalar_lea.vmem %s72_s24, 128 }
  0x84   :  { %p6851_p3 = scmp.ne.s32.totalorder %s72_s24, %s6850_s2  ;;  %p6855_p4 = scmp.lt.s32.totalorder %s72_s24, %s72_s24 }
  0x85   :  { %p6856_p5 = scmp.lt.s32.totalorder %s6854_s26, %s6850_s2 }
  0x87   :  { %p6857_p6 = por %p6856_p5, %p6855_p4 }
  0x89   :  { %p6858_p7 = pnand %p6857_p6, %p6851_p3 }
  0x8b   :  { %6861 = shalt.err (!%p6858_p7)
}
  0x8c   :  { %74 = dma.hbm_to_vmem [thread:$0]  %s7567_s4, 112, %s72_s24, [#allocation9]  }
  0x8d   :  { %s6862_s19 = scalar_lea.hbm %s7569_s6, 112 }
  0x8e   :  { %p6863_p8 = scmp.ne.s32.totalorder %s7569_s6, %s6862_s19  ;;  %p6866_p9 = scmp.lt.u32.totalorder %s6862_s19, %s7569_s6 }
  0x90   :  { %p6868_p10 = pnand %p6866_p9, %p6863_p8 }
  0x92   :  { %6871 = shalt.err (!%p6868_p10)
}
  0x93   :  { %s6872_s21 = scalar_lea.vmem %s94_s29, 112  ;;  %s6876_s22 = scalar_lea.vmem %s94_s29, 128 }
  0x94   :  { %p6873_p11 = scmp.ne.s32.totalorder %s94_s29, %s6872_s21  ;;  %p6877_p12 = scmp.lt.s32.totalorder %s94_s29, %s94_s29 }
  0x95   :  { %p6878_p13 = scmp.lt.s32.totalorder %s6876_s22, %s6872_s21 }
  0x97   :  { %p6879_p0 = por %p6878_p13, %p6877_p12 }
  0x99   :  { %p6880_p1 = pnand %p6879_p0, %p6873_p11 }
  0x9b   :  { %6883 = shalt.err (!%p6880_p1)
}
  0x9c   :  { %96 = dma.hbm_to_vmem [thread:$0]  %s7569_s6, 112, %s94_s29, [#allocation12]  }
  0x9d   :  { %s6977_s1 = smov [#allocation16]   ;;  %s6978_s24 = smov [#allocation19]  }
  0x9e   :  { %s113_s18 = sshll.u32 %s6977_s1, 4  ;;  %s135_s25 = sshll.u32 %s6978_s24, 4  ;;  %s114_s18 = int_to_ptr.vmem [resolvable:$true] %s113_s18  ;;  %s136_s25 = int_to_ptr.vmem [resolvable:$true] %s135_s25 }
  0x9f   :  { %s6884_s27 = scalar_lea.hbm %s7571_s8, 112 }
  0xa0   :  { %p6885_p2 = scmp.ne.s32.totalorder %s7571_s8, %s6884_s27  ;;  %p6888_p3 = scmp.lt.u32.totalorder %s6884_s27, %s7571_s8 }
  0xa2   :  { %p6890_p4 = pnand %p6888_p3, %p6885_p2 }
  0xa4   :  { %6893 = shalt.err (!%p6890_p4)
}
  0xa5   :  { %s6894_s6 = scalar_lea.vmem %s114_s18, 112  ;;  %s6898_s29 = scalar_lea.vmem %s114_s18, 128 }
  0xa6   :  { %p6895_p5 = scmp.ne.s32.totalorder %s114_s18, %s6894_s6  ;;  %p6899_p6 = scmp.lt.s32.totalorder %s114_s18, %s114_s18 }
  0xa7   :  { %p6900_p7 = scmp.lt.s32.totalorder %s6898_s29, %s6894_s6 }
  0xa9   :  { %p6901_p8 = por %p6900_p7, %p6899_p6 }
  0xab   :  { %p6902_p9 = pnand %p6901_p8, %p6895_p5 }
  0xad   :  { %6905 = shalt.err (!%p6902_p9)
}
  0xae   :  { %116 = dma.hbm_to_vmem [thread:$0]  %s7571_s8, 112, %s114_s18, [#allocation15]  }
  0xaf   :  { %s6906_s16 = scalar_lea.hbm %s7573_s10, 16 }
  0xb0   :  { %p6907_p10 = scmp.ne.s32.totalorder %s7573_s10, %s6906_s16  ;;  %p6910_p11 = scmp.lt.u32.totalorder %s6906_s16, %s7573_s10 }
  0xb2   :  { %p6912_p12 = pnand %p6910_p11, %p6907_p10 }
  0xb4   :  { %6915 = shalt.err (!%p6912_p12)
}
  0xb5   :  { %s6916_s20 = scalar_lea.vmem %s136_s25, 16  ;;  %s6920_s7 = scalar_lea.vmem %s136_s25, 32 }
  0xb6   :  { %p6917_p13 = scmp.ne.s32.totalorder %s136_s25, %s6916_s20  ;;  %p6921_p0 = scmp.lt.s32.totalorder %s136_s25, %s136_s25 }
  0xb7   :  { %p6922_p1 = scmp.lt.s32.totalorder %s6920_s7, %s6916_s20 }
  0xb9   :  { %p6923_p2 = por %p6922_p1, %p6921_p0 }
  0xbb   :  { %p6924_p3 = pnand %p6923_p2, %p6917_p13 }
  0xbd   :  { %6927 = shalt.err (!%p6924_p3)
}
  0xbe   :  { %138 = dma.hbm_to_vmem [thread:$0]  %s7573_s10, 16, %s136_s25, [#allocation18]  }
  0xbf   :  { %6950 = dma.done.wait [#allocation3], 128  }
  0xc0   :  { %6951 = vsyncadd [#allocation3], 4294967168 }
  0xc1   :  { %6952 = dma.done.wait [#allocation6], 1904  }
  0xc2   :  { %6953 = vsyncadd [#allocation6], 4294965392 }
  0xc3   :  { %6954 = dma.done.wait [#allocation9], 224  }
  0xc4   :  { %6955 = vsyncadd [#allocation9], 4294967072 }
  0xc5   :  { %6956 = dma.done.wait [#allocation12], 50288  }
  0xc6   :  { %6957 = vsyncadd [#allocation12], 4294917008 }
  0xc7   :  { %6958 = dma.done.wait [#allocation15], 224  }
  0xc8   :  { %6959 = vsyncadd [#allocation15], 4294967072 }
  0xc9   :  { %6960 = dma.done.wait [#allocation18], 7184  }
  0xca   :  { %6961 = vsyncadd [#allocation18], 4294960112  ;;  %v6979_v0 = vmov 0.0   ;;  %v6078_v1 = vld [vmem:[#allocation5 + $0x4] ss:$28 sps:$4 sm:$0xff]   ;;  %v172_v6 = vld [vmem:[#allocation2] sm:$0xff] }
  0xcb   :  { %322 = vmatprep.mubr.f32.mxu1 %v6979_v0  ;;  %v6080_v2 = vld [vmem:[#allocation5] ss:$28 sps:$4 sm:$0xff]   ;;  %4687 = vmatprep.subr.bf16.mxu1 %v6078_v1  ;;  %v6083_v4 = vld [vmem:[#allocation5 + $0x38] ss:$28 sps:$4 sm:$0xff]   ;;  %v6084_v5 = vld [vmem:[#allocation5 + $0xc] ss:$28 sps:$4 sm:$0xff]  }
  0xcc   :  { %v6081_v3 = vld [vmem:[#allocation5 + $0x3c] ss:$28 sps:$4 sm:$0xff]   ;;  %4689 = vmatpush1.bf16.msra.mxu1 %v6080_v2  ;;  %vm254_vm0 = vcmask 261120   ;;  %v6086_v7 = vld [vmem:[#allocation5 + $0x8] ss:$28 sps:$4 sm:$0xff]   ;;  %v6980_v15 = vmov 0.0|0.0  }
  0xcd   :  { %4691 = vmatprep.subr.bf16.mxu1 %v6081_v3  ;;  %v6087_v8 = vld [vmem:[#allocation5 + $0x44] ss:$28 sps:$4 sm:$0xff]   ;;  %v6090_v10 = vld [vmem:[#allocation5 + $0x14] ss:$28 sps:$4 sm:$0xff]   ;;  %v6093_v12 = vld [vmem:[#allocation5 + $0x4c] ss:$28 sps:$4 sm:$0xff]  }
  0xce   :  { %v6089_v9 = vld [vmem:[#allocation5 + $0x40] ss:$28 sps:$4 sm:$0xff]   ;;  %v6092_v11 = vld [vmem:[#allocation5 + $0x10] ss:$28 sps:$4 sm:$0xff]   ;;  %v6095_v13 = vld [vmem:[#allocation5 + $0x48] ss:$28 sps:$4 sm:$0xff]  }
  0xcf   :  { %v6096_v14 = vld [vmem:[#allocation5 + $0x18] ss:$28 sps:$4 sm:$0xff]   ;;  %v6097_v16 = vld [vmem:[#allocation5 + $0x50] ss:$28 sps:$4 sm:$0xff]   ;;  %vm6981_vm1 = vmmov 0   ;;  %s6983_s10 = smov [#allocation20]  }
  0xd0   :  { %4693 = vmatpush1.bf16.msra.mxu1 %v6083_v4  ;;  %v6098_v17 = vld [vmem:[#allocation11 + $0x4] ss:$28 sps:$4 sm:$0xff]   ;;  %v6100_v18 = vld [vmem:[#allocation11 + $0xc] ss:$28 sps:$4 sm:$0xff]   ;;  %v6104_v21 = vld [vmem:[#allocation11 + $0x3c] ss:$28 sps:$4 sm:$0xff]  }
  0xd1   :  { %4695 = vmatprep.subr.bf16.mxu1 %v6084_v5  ;;  %v6102_v19 = vld [vmem:[#allocation11 + $0x8] ss:$28 sps:$4 sm:$0xff]   ;;  %v6103_v20 = vld [vmem:[#allocation11] ss:$28 sps:$4 sm:$0xff]   ;;  %4717 = vmatprep.subr.bf16.mxu0 %v6098_v17  ;;  %v6109_v24 = vld [vmem:[#allocation11 + $0x38] ss:$28 sps:$4 sm:$0xff]  }
  0xd2   :  { %4719 = vmatpush1.bf16.msra.mxu0 %v6103_v20  ;;  %v6106_v22 = vld [vmem:[#allocation11 + $0x44] ss:$28 sps:$4 sm:$0xff]   ;;  %v6110_v25 = vld [vmem:[#allocation11 + $0x74] ss:$28 sps:$4 sm:$0xff]   ;;  %v6112_v26 = vld [vmem:[#allocation11 + $0x7c] ss:$28 sps:$4 sm:$0xff]  }
  0xd3   :  { %4072 = vmatmul.mubr.msk.f32.vlgmr.msra.gmra.mrb[0].mxu1 %vm254_vm0, %v172_v6  ;;  %v6108_v23 = vld [vmem:[#allocation11 + $0x40] ss:$28 sps:$4 sm:$0xff]   ;;  %4721 = vmatprep.subr.bf16.mxu0 %v6104_v21  ;;  %v6114_v27 = vld [vmem:[#allocation11 + $0x78] ss:$28 sps:$4 sm:$0xff]   ;;  %v6115_v28 = vld [vmem:[#allocation11 + $0x70] ss:$28 sps:$4 sm:$0xff]   ;;  %v219_v21 = vlaneseq }
  0xd4   :  { %4697 = vmatpush1.bf16.msra.mxu1 %v6086_v7  ;;  %393 = vmatprep.mubr.f32.mxu1 %v6979_v0  ;;  %v6116_v29 = vld [vmem:[#allocation11 + $0xac] ss:$28 sps:$4 sm:$0xff]   ;;  %v6118_v30 = vld [vmem:[#allocation11 + $0xb4] ss:$28 sps:$4 sm:$0xff]   ;;  %v6122_v33 = vld [vmem:[#allocation11 + $0xe4] ss:$28 sps:$4 sm:$0xff]  }
  0xd5   :  { %4699 = vmatprep.subr.bf16.mxu1 %v6087_v8  ;;  %v6120_v31 = vld [vmem:[#allocation11 + $0xb0] ss:$28 sps:$4 sm:$0xff]   ;;  %v6121_v32 = vld [vmem:[#allocation11 + $0xa8] ss:$28 sps:$4 sm:$0xff]   ;;  %v6127_v36 = vld [vmem:[#allocation11 + $0xe0] ss:$28 sps:$4 sm:$0xff]  }
  0xd6   :  { %4723 = vmatpush1.bf16.msra.mxu0 %v6109_v24  ;;  %v6124_v34 = vld [vmem:[#allocation11 + $0xec] ss:$28 sps:$4 sm:$0xff]   ;;  %v6128_v37 = vld [vmem:[#allocation11 + $0x11c] ss:$28 sps:$4 sm:$0xff]   ;;  %v6130_v38 = vld [vmem:[#allocation11 + $0x124] ss:$28 sps:$4 sm:$0xff]  }
  0xd7   :  { %4725 = vmatprep.subr.bf16.mxu0 %v6110_v25  ;;  %v6126_v35 = vld [vmem:[#allocation11 + $0xe8] ss:$28 sps:$4 sm:$0xff]   ;;  %v6132_v39 = vld [vmem:[#allocation11 + $0x120] ss:$28 sps:$4 sm:$0xff]   ;;  %v6133_v40 = vld [vmem:[#allocation11 + $0x118] ss:$28 sps:$4 sm:$0xff]  }
  0xd8   :  { %4701 = vmatpush1.bf16.msra.mxu1 %v6089_v9  ;;  %v6134_v41 = vld [vmem:[#allocation11 + $0x154] ss:$28 sps:$4 sm:$0xff]   ;;  %v6136_v42 = vld [vmem:[#allocation11 + $0x15c] ss:$28 sps:$4 sm:$0xff]   ;;  %v6140_v45 = vld [vmem:[#allocation11 + $0x18c] ss:$28 sps:$4 sm:$0xff]  }
  0xd9   :  { %4703 = vmatprep.subr.bf16.mxu1 %v6090_v10  ;;  %v6138_v43 = vld [vmem:[#allocation11 + $0x158] ss:$28 sps:$4 sm:$0xff]   ;;  %v6139_v44 = vld [vmem:[#allocation11 + $0x150] ss:$28 sps:$4 sm:$0xff]   ;;  %v6145_v48 = vld [vmem:[#allocation11 + $0x188] ss:$28 sps:$4 sm:$0xff]  }
  0xda   :  { %4727 = vmatpush1.bf16.msra.mxu0 %v6115_v28  ;;  %v6142_v46 = vld [vmem:[#allocation11 + $0x194] ss:$28 sps:$4 sm:$0xff]   ;;  %v6146_v49 = vld [vmem:[#allocation11 + $0x1c4] ss:$28 sps:$4 sm:$0xff]   ;;  %v6148_v50 = vld [vmem:[#allocation11 + $0x1cc] ss:$28 sps:$4 sm:$0xff]  }
  0xdb   :  { %4073 = vmatmul.mubr.msk.f32.vlgmr.msra.gmra.mrb[2].mxu1 %vm254_vm0, %v172_v6  ;;  %4729 = vmatprep.subr.bf16.mxu0 %v6116_v29  ;;  %v6144_v47 = vld [vmem:[#allocation11 + $0x190] ss:$28 sps:$4 sm:$0xff]   ;;  %v6150_v51 = vld [vmem:[#allocation11 + $0x1c8] ss:$28 sps:$4 sm:$0xff]   ;;  %v6151_v52 = vld [vmem:[#allocation11 + $0x1c0] ss:$28 sps:$4 sm:$0xff]  }
  0xdc   :  { %4705 = vmatpush1.bf16.msra.mxu1 %v6092_v11  ;;  %464 = vmatprep.mubr.f32.mxu1 %v6979_v0  ;;  %v6152_v53 = vld [vmem:[#allocation11 + $0x1fc] ss:$28 sps:$4 sm:$0xff]   ;;  %v6154_v54 = vld [vmem:[#allocation11 + $0x204] ss:$28 sps:$4 sm:$0xff]   ;;  %v6158_v57 = vld [vmem:[#allocation11 + $0x234] ss:$28 sps:$4 sm:$0xff]  }
  0xdd   :  { %4707 = vmatprep.subr.bf16.mxu1 %v6093_v12  ;;  %v6156_v55 = vld [vmem:[#allocation11 + $0x200] ss:$28 sps:$4 sm:$0xff]   ;;  %v6157_v56 = vld [vmem:[#allocation11 + $0x1f8] ss:$28 sps:$4 sm:$0xff]   ;;  %v6163_v60 = vld [vmem:[#allocation11 + $0x230] ss:$28 sps:$4 sm:$0xff]  }
  0xde   :  { %4731 = vmatpush1.bf16.msra.mxu0 %v6121_v32  ;;  %v6160_v58 = vld [vmem:[#allocation11 + $0x23c] ss:$28 sps:$4 sm:$0xff]   ;;  %v6164_v61 = vld [vmem:[#allocation11 + $0x26c] ss:$28 sps:$4 sm:$0xff]   ;;  %v6166_v62 = vld [vmem:[#allocation11 + $0x274] ss:$28 sps:$4 sm:$0xff]  }
  0xdf   :  { %4733 = vmatprep.subr.bf16.mxu0 %v6122_v33  ;;  %v6162_v59 = vld [vmem:[#allocation11 + $0x238] ss:$28 sps:$4 sm:$0xff]   ;;  %v6168_v63 = vld [vmem:[#allocation11 + $0x270] ss:$28 sps:$4 sm:$0xff]   ;;  %v6169_v1 = vld [vmem:[#allocation11 + $0x268] ss:$28 sps:$4 sm:$0xff]  }
  0xe0   :  { %4709 = vmatpush1.bf16.msra.mxu1 %v6095_v13  ;;  %v6170_v2 = vld [vmem:[#allocation11 + $0x2a4] ss:$28 sps:$4 sm:$0xff]   ;;  %v6172_v3 = vld [vmem:[#allocation11 + $0x2ac] ss:$28 sps:$4 sm:$0xff]   ;;  %v6181_v9 = vld [vmem:[#allocation11 + $0x2d8] ss:$28 sps:$4 sm:$0xff]  }
  0xe1   :  { %4710 = vmatprep.subr.bf16.mxu1 %v6980_v15  ;;  %v6174_v4 = vld [vmem:[#allocation11 + $0x2a8] ss:$28 sps:$4 sm:$0xff]   ;;  %v6175_v5 = vld [vmem:[#allocation11 + $0x2a0] ss:$28 sps:$4 sm:$0xff]   ;;  %v6182_v10 = vld [vmem:[#allocation11 + $0x314] ss:$28 sps:$4 sm:$0xff]  }
  0xe2   :  { %4735 = vmatpush1.bf16.msra.mxu0 %v6127_v36  ;;  %v6178_v7 = vld [vmem:[#allocation11 + $0x2e4] ss:$28 sps:$4 sm:$0xff]   ;;  %v6184_v11 = vld [vmem:[#allocation11 + $0x31c] ss:$28 sps:$4 sm:$0xff]   ;;  %v6187_v13 = vld [vmem:[#allocation11 + $0x310] ss:$28 sps:$4 sm:$0xff]  }
  0xe3   :  { %4074 = vmatmul.mubr.msk.f32.vlgmr.msra.gmra.mrb[4].mxu1 %vm254_vm0, %v172_v6  ;;  %4737 = vmatprep.subr.bf16.mxu0 %v6128_v37  ;;  %v6180_v8 = vld [vmem:[#allocation11 + $0x2e0] ss:$28 sps:$4 sm:$0xff]   ;;  %v6186_v12 = vld [vmem:[#allocation11 + $0x318] ss:$28 sps:$4 sm:$0xff]   ;;  %v6192_v17 = vld [vmem:[#allocation11 + $0x350] ss:$28 sps:$4 sm:$0xff]  }
  0xe4   :  { %4712 = vmatpush3.bf16.msra.mxu1 %v6096_v14  ;;  %4613 = vmatprep.mubr.msk.f32.mxu1 %vm6981_vm1, %v6979_v0  ;;  %v6188_v14 = vld [vmem:[#allocation11 + $0x34c] ss:$28 sps:$4 sm:$0xff]   ;;  %s4058_s22 = sshll.u32 %s6983_s10, 4  ;;  %s4059_s22 = int_to_ptr.vmem [resolvable:$true] %s4058_s22 }
  0xe5   :  { %4713 = vmatprep.subr.bf16.mxu1 %v6980_v15  ;;  %v6197_v20 = vld [vmem:[#allocation11 + $0x38c] ss:$28 sps:$4 sm:$0xff]   ;;  %s6928_s4 = scalar_lea.vmem %s4059_s22, 128  ;;  %p6933_p5 = scmp.lt.s32.totalorder %s4059_s22, %s4059_s22 }
  0xe6   :  { %4739 = vmatpush1.bf16.msra.mxu0 %v6133_v40  ;;  %v7198_v24 = vld [vmem:[#allocation7] sm:$0xff]  ;;  %p6929_p4 = scmp.ne.s32.totalorder %s4059_s22, %s6928_s4  ;;  %p6934_p6 = scmp.lt.s32.totalorder %s6928_s4, %s6928_s4 }
  0xe7   :  { %4741 = vmatprep.subr.bf16.mxu0 %v6134_v41 }
  0xe8   :  { %4715 = vmatpush3.bf16.msra.mxu1 %v6097_v16  ;;  %v6190_v16 = vld [vmem:[#allocation11 + $0x354] ss:$28 sps:$4 sm:$0xff]   ;;  %p6935_p7 = por %p6934_p6, %p6933_p5 }
  0xe9   :  { %4941 = vmatprep.subr.bf16.mxu1 %v6100_v18  ;;  %v6193_v18 = vld [vmem:[#allocation11 + $0x348] ss:$28 sps:$4 sm:$0xff]  }
  0xea   :  { %4743 = vmatpush1.bf16.msra.mxu0 %v6139_v44  ;;  %p6936_p8 = pnand %p6935_p7, %p6929_p4 }
  0xeb   :  { %4614 = vmatmul.mubr.msk.f32.vlgmr.msra.gmra.mrb[6].mxu1 %vm254_vm0, %v172_v6  ;;  %4745 = vmatprep.subr.bf16.mxu0 %v6140_v45  ;;  %v6176_v6 = vld [vmem:[#allocation11 + $0x2dc] ss:$28 sps:$4 sm:$0xff]  }
  0xec   :  { %4943 = vmatpush1.bf16.msra.mxu1 %v6102_v19  ;;  %v6194_v19 = vld [vmem:[#allocation11 + $0x384] ss:$28 sps:$4 sm:$0xff]  }
  0xed   :  { %4945 = vmatprep.subr.bf16.mxu1 %v6106_v22  ;;  %v7193_v22 = vshrl.u32 %v219_v21, 7 }
  0xee   :  { %4747 = vmatpush1.bf16.msra.mxu0 %v6145_v48 }
  0xef   :  { %4749 = vmatprep.subr.bf16.mxu0 %v6146_v49  ;;  %v7201_v25 = vsub.s32 1, %v7193_v22  ;;  %v7215_v33 = vsub.s32 3, %v7193_v22 }
  0xf0   :  { %4947 = vmatpush1.bf16.msra.mxu1 %v6108_v23  ;;  %v7196_v23 = vsub.s32 0, %v7193_v22 }
  0xf1   :  { %4949 = vmatprep.subr.bf16.mxu1 %v6112_v26  ;;  %v234_v45 = vrot.slane %v7198_v24, %v7215_v33 }
  0xf2   :  { %4751 = vmatpush1.bf16.msra.mxu0 %v6151_v52  ;;  %v222_v26 = vrot.slane %v7198_v24, %v7196_v23 }
  0xf3   :  { %4753 = vmatprep.subr.bf16.mxu0 %v6152_v53 }
  0xf4   :  { %4951 = vmatpush1.bf16.msra.mxu1 %v6114_v27  ;;  %v226_v27 = vrot.slane %v7198_v24, %v7201_v25 }
  0xf5   :  { %4953 = vmatprep.subr.bf16.mxu1 %v6118_v30 }
  0xf6   :  { %4755 = vmatpush1.bf16.msra.mxu0 %v6157_v56 }
  0xf7   :  { %4757 = vmatprep.subr.bf16.mxu0 %v6158_v57 }
  0xf8   :  { %4955 = vmatpush1.bf16.msra.mxu1 %v6120_v31  ;;  %v7210_v31 = vsub.s32 2, %v7193_v22 }
  0xf9   :  { %4957 = vmatprep.subr.bf16.mxu1 %v6124_v34 }
  0xfa   :  { %4759 = vmatpush1.bf16.msra.mxu0 %v6163_v60  ;;  %v230_v41 = vrot.slane %v7198_v24, %v7210_v31  ;;  %v7244_v60 = vsub.s32 6, %v7193_v22 }
  0xfb   :  { %4761 = vmatprep.subr.bf16.mxu0 %v6164_v61 }
  0xfc   :  { %4959 = vmatpush1.bf16.msra.mxu1 %v6126_v35 }
  0xfd   :  { %4961 = vmatprep.subr.bf16.mxu1 %v6130_v38  ;;  %v7224_v38 = vsub.s32 4, %v7193_v22 }
  0xfe   :  { %4763 = vmatpush1.bf16.msra.mxu0 %v6169_v1 }
  0xff   :  { %4765 = vmatprep.subr.bf16.mxu0 %v6170_v2 }
 0x100   :  { %4963 = vmatpush1.bf16.msra.mxu1 %v6132_v39 }
 0x101   :  { %4965 = vmatprep.subr.bf16.mxu1 %v6136_v42  ;;  %v7230_v42 = vsub.s32 5, %v7193_v22 }
 0x102   :  { %4767 = vmatpush1.bf16.msra.mxu0 %v6175_v5 }
 0x103   :  { %4769 = vmatprep.subr.bf16.mxu0 %v6176_v6  ;;  %v242_v56 = vrot.slane %v7198_v24, %v7230_v42 }
 0x104   :  { %4967 = vmatpush1.bf16.msra.mxu1 %v6138_v43 }
 0x105   :  { %4969 = vmatprep.subr.bf16.mxu1 %v6142_v46 }
 0x106   :  { %4771 = vmatpush1.bf16.msra.mxu0 %v6181_v9 }
 0x107   :  { %4773 = vmatprep.subr.bf16.mxu0 %v6182_v10 }
 0x108   :  { %4971 = vmatpush1.bf16.msra.mxu1 %v6144_v47 }
 0x109   :  { %4973 = vmatprep.subr.bf16.mxu1 %v6148_v50 }
 0x10a   :  { %4775 = vmatpush1.bf16.msra.mxu0 %v6187_v13 }
 0x10b   :  { %4777 = vmatprep.subr.bf16.mxu0 %v6188_v14 }
 0x10c   :  { %4975 = vmatpush1.bf16.msra.mxu1 %v6150_v51  ;;  %v238_v51 = vrot.slane %v7198_v24, %v7224_v38 }
 0x10d   :  { %4977 = vmatprep.subr.bf16.mxu1 %v6154_v54 }
 0x10e   :  { %4779 = vmatpush1.bf16.msra.mxu0 %v6193_v18 }
 0x10f   :  { %4781 = vmatprep.subr.bf16.mxu0 %v6194_v19 }
 0x110   :  { %4979 = vmatpush1.bf16.msra.mxu1 %v6156_v55 }
 0x111   :  { %4981 = vmatprep.subr.bf16.mxu1 %v6160_v58 }
 0x114   :  { %4983 = vmatpush1.bf16.msra.mxu1 %v6162_v59 }
 0x115   :  { %4985 = vmatprep.subr.bf16.mxu1 %v6166_v62 }
 0x118   :  { %4987 = vmatpush1.bf16.msra.mxu1 %v6168_v63 }
 0x119   :  { %4989 = vmatprep.subr.bf16.mxu1 %v6172_v3 }
 0x11c   :  { %4991 = vmatpush1.bf16.msra.mxu1 %v6174_v4 }
 0x11d   :  { %4993 = vmatprep.subr.bf16.mxu1 %v6178_v7 }
 0x120   :  { %4995 = vmatpush1.bf16.msra.mxu1 %v6180_v8 }
 0x121   :  { %4997 = vmatprep.subr.bf16.mxu1 %v6184_v11 }
 0x124   :  { %4999 = vmatpush1.bf16.msra.mxu1 %v6186_v12 }
 0x125   :  { %5001 = vmatprep.subr.bf16.mxu1 %v6190_v16 }
 0x128   :  { %5003 = vmatpush1.bf16.msra.mxu1 %v6192_v17 }
 0x129   :  { %5005 = vmatprep.subr.bf16.mxu1 %v6197_v20 }
 0x1a6   :  { %v324_v28 = vpop.f32.mrb[0].mxu1 }
 0x1a7   :  { %v7207_v29 = vadd.f32 %v324_v28, %v222_v26  ;;  %v326_v30 = vpop.f32.mrb[1].mxu1 }
 0x1a8   :  { %v7212_v32 = vadd.f32 %v326_v30, %v226_v27 }
 0x1a9   :  { %v541_v34 = vrot.slane %v7207_v29, 4  ;;  %v583_v35 = vmul.f32 %v7207_v29, %v7207_v29 }
 0x1aa   :  { %v547_v36 = vrot.slane %v7212_v32, 4  ;;  %v584_v37 = vmul.f32 %v7212_v32, %v7212_v32 }
 0x1ab   :  { %v542_v39 = vadd.f32 %v541_v34, %v7207_v29  ;;  %v590_v40 = vrot.slane %v583_v35, 4 }
 0x1ac   :  { %v548_v43 = vadd.f32 %v547_v36, %v7212_v32  ;;  %v596_v44 = vrot.slane %v584_v37, 4 }
 0x1ad   :  { %v543_v46 = vrot.slane %v542_v39, 2  ;;  %v591_v47 = vadd.f32 %v590_v40, %v583_v35  ;;  %v246_v40 = vrot.slane %v7198_v24, %v7244_v60 }
 0x1ae   :  { %v549_v48 = vrot.slane %v548_v43, 2  ;;  %v597_v49 = vadd.f32 %v596_v44, %v584_v37  ;;  %v395_v50 = vpop.f32.mrb[2].mxu1 }
 0x1af   :  { %v544_v52 = vadd.f32 %v543_v46, %v542_v39  ;;  %v592_v53 = vrot.slane %v591_v47, 2  ;;  %v7237_v54 = vadd.f32 %v395_v50, %v230_v41  ;;  %v397_v55 = vpop.f32.mrb[3].mxu1 }
 0x1b0   :  { %v550_v57 = vadd.f32 %v549_v48, %v548_v43  ;;  %v598_v58 = vrot.slane %v597_v49, 2  ;;  %v7241_v59 = vadd.f32 %v397_v55, %v234_v45 }
 0x1b1   :  { %v545_v61 = vrot.slane %v544_v52, 1  ;;  %v593_v62 = vadd.f32 %v592_v53, %v591_v47  ;;  %v553_v63 = vrot.slane %v7237_v54, 4  ;;  %v585_v1 = vmul.f32 %v7237_v54, %v7237_v54 }
 0x1b2   :  { %v551_v2 = vrot.slane %v550_v57, 1  ;;  %v599_v3 = vadd.f32 %v598_v58, %v597_v49  ;;  %v559_v4 = vrot.slane %v7241_v59, 4  ;;  %v586_v5 = vmul.f32 %v7241_v59, %v7241_v59 }
 0x1b3   :  { %v546_v6 = vadd.f32 %v545_v61, %v544_v52  ;;  %v594_v7 = vrot.slane %v593_v62, 1  ;;  %v554_v8 = vadd.f32 %v553_v63, %v7237_v54  ;;  %v602_v9 = vrot.slane %v585_v1, 4 }
 0x1b4   :  { %v552_v10 = vadd.f32 %v551_v2, %v550_v57  ;;  %v600_v11 = vrot.slane %v599_v3, 1  ;;  %v560_v12 = vadd.f32 %v559_v4, %v7241_v59  ;;  %v608_v13 = vrot.slane %v586_v5, 4 }
 0x1b5   :  { %v595_v14 = vadd.f32 %v594_v7, %v593_v62  ;;  %v7254_v16 = vmul.f32 0.125, %v546_v6  ;;  %v555_v17 = vrot.slane %v554_v8, 2  ;;  %v603_v18 = vadd.f32 %v602_v9, %v585_v1 }
 0x1b6   :  { %v601_v19 = vadd.f32 %v600_v11, %v599_v3  ;;  %v7256_v20 = vmul.f32 0.125, %v552_v10  ;;  %v561_v21 = vrot.slane %v560_v12, 2  ;;  %v609_v26 = vadd.f32 %v608_v13, %v586_v5  ;;  %v466_v27 = vpop.f32.mrb[4].mxu1 }
 0x1b7   :  { %v639_v28 = vmul.f32 0.125, %v595_v14  ;;  %v646_v30 = vmul.f32 %v7254_v16, %v7254_v16  ;;  %v556_v34 = vadd.f32 %v555_v17, %v554_v8  ;;  %v468_v35 = vpop.f32.mrb[5].mxu1  ;;  %v604_v39 = vrot.slane %v603_v18, 2 }
 0x1b8   :  { %v640_v36 = vmul.f32 0.125, %v601_v19  ;;  %v647_v37 = vmul.f32 %v7256_v20, %v7256_v20  ;;  %v562_v44 = vadd.f32 %v561_v21, %v560_v12  ;;  %v610_v45 = vrot.slane %v609_v26, 2 }
 0x1b9   :  { %v653_v41 = vsub.f32 %v639_v28, %v646_v30  ;;  %v557_v43 = vrot.slane %v556_v34, 1  ;;  %v605_v47 = vadd.f32 %v604_v39, %v603_v18  ;;  %v7264_v48 = vadd.f32 %v466_v27, %v238_v51 }
 0x1ba   :  { %v654_v46 = vsub.f32 %v640_v36, %v647_v37  ;;  %v7266_v49 = vadd.f32 %v468_v35, %v242_v56  ;;  %v563_v53 = vrot.slane %v562_v44, 1  ;;  %v611_v55 = vadd.f32 %v610_v45, %v609_v26 }
 0x1bb   :  { %v660_v50 = vmax.f32 %v653_v41, 0.0  ;;  %v558_v52 = vadd.f32 %v557_v43, %v556_v34  ;;  %v606_v58 = vrot.slane %v605_v47, 1  ;;  %v565_v61 = vrot.slane %v7264_v48, 4 }
 0x1bc   :  { %v661_v57 = vmax.f32 %v654_v46, 0.0  ;;  %v587_v24 = vmul.f32 %v7264_v48, %v7264_v48  ;;  %v564_v1 = vadd.f32 %v563_v53, %v562_v44  ;;  %v612_v2 = vrot.slane %v611_v55, 1 }
 0x1bd   :  { %v668_v62 = vadd.f32 1e-05, %v660_v50  ;;  %v7271_v63 = vmul.f32 0.125, %v558_v52  ;;  %v607_v3 = vadd.f32 %v606_v58, %v605_v47  ;;  %v566_v56 = vadd.f32 %v565_v61, %v7264_v48 }
 0x1be   :  { %v669_v51 = vadd.f32 1e-05, %v661_v57  ;;  %v614_v4 = vrot.slane %v587_v24, 4  ;;  %v537_v5 = vpop.f32.mrb[6].mxu1  ;;  %v613_v8 = vadd.f32 %v612_v2, %v611_v55  ;;  %v7278_v11 = vmul.f32 0.125, %v564_v1 }
 0x1bf   :  { %6658 = vrsqrt.f32 %v668_v62  ;;  %v648_v6 = vmul.f32 %v7271_v63, %v7271_v63  ;;  %v741_v7 = vsub.f32 %v7237_v54, %v7271_v63  ;;  %v4615_v9 = vpop.f32.mrb[7].mxu1  ;;  %v641_v10 = vmul.f32 0.125, %v607_v3  ;;  %v6196_v54 = vld [vmem:[#allocation11 + $0x380] ss:$28 sps:$4 sm:$0xff]   ;;  %v6199_v63 = vld [vmem:[#allocation11 + $0x388] ss:$28 sps:$4 sm:$0xff]  }
 0x1c0   :  { %6660 = vrsqrt.f32 %v669_v51  ;;  %v567_v12 = vrot.slane %v566_v56, 2  ;;  %v642_v13 = vmul.f32 0.125, %v613_v8  ;;  %v615_v14 = vadd.f32 %v614_v4, %v587_v24 }
 0x1c1   :  { %v571_v17 = vrot.slane %v7266_v49, 4  ;;  %v588_v18 = vmul.f32 %v7266_v49, %v7266_v49  ;;  %v655_v19 = vsub.f32 %v641_v10, %v648_v6  ;;  %v649_v21 = vmul.f32 %v7278_v11, %v7278_v11 }
 0x1c2   :  { %v568_v26 = vadd.f32 %v567_v12, %v566_v56  ;;  %v616_v27 = vrot.slane %v615_v14, 2  ;;  %v7286_v34 = vadd.f32 %v537_v5, %v246_v40  ;;  %v6982_v35 = vmov 1966171168  }
 0x1c3   :  { %v572_v28 = vadd.f32 %v571_v17, %v7266_v49  ;;  %v620_v30 = vrot.slane %v588_v18, 4  ;;  %v693_v36 = vunpack.c.l.s4 %v6982_v35  ;;  %v662_v37 = vmax.f32 %v655_v19, 0.0 }
 0x1c4   :  { %v656_v39 = vsub.f32 %v642_v13, %v649_v21  ;;  %v569_v41 = vrot.slane %v568_v26, 1  ;;  %v617_v43 = vadd.f32 %v616_v27, %v615_v14  ;;  %v577_v46 = vrot.slane %v7286_v34, 4 }
 0x1c5   :  { %v573_v44 = vrot.slane %v572_v28, 2  ;;  %v621_v45 = vadd.f32 %v620_v30, %v588_v18  ;;  %v670_v47 = vadd.f32 1e-05, %v662_v37  ;;  %v589_v53 = vmul.f32 %v7286_v34, %v7286_v34 }
 0x1c6   :  { %v663_v50 = vmax.f32 %v656_v39, 0.0  ;;  %v570_v52 = vadd.f32 %v569_v41, %v568_v26  ;;  %v618_v55 = vrot.slane %v617_v43, 1  ;;  %v578_v58 = vadd.f32 %v577_v46, %v7286_v34 }
 0x1c7   :  { %v574_v57 = vadd.f32 %v573_v44, %v572_v28  ;;  %v622_v40 = vrot.slane %v621_v45, 2  ;;  %6662 = vrsqrt.f32 %v670_v47  ;;  %v626_v62 = vrot.slane %v589_v53, 4 }
 0x1c8   :  { %v671_v61 = vadd.f32 1e-05, %v663_v50  ;;  %v7292_v24 = vmul.f32 0.125, %v570_v52  ;;  %v619_v2 = vadd.f32 %v618_v55, %v617_v43  ;;  %v579_v56 = vrot.slane %v578_v58, 2 }
 0x1c9   :  { %v6659_v1 = vpop.eup %6658  ;;  %v575_v51 = vrot.slane %v574_v57, 1  ;;  %v623_v3 = vadd.f32 %v622_v40, %v621_v45  ;;  %v627_v8 = vadd.f32 %v626_v62, %v589_v53  ;;  %v694_v26 = vunpack.c.0.s8 %v693_v36 }
 0x1ca   :  { %v6661_v4 = vpop.eup %6660  ;;  %6664 = vrsqrt.f32 %v671_v61  ;;  %v650_v5 = vmul.f32 %v7292_v24, %v7292_v24  ;;  %v743_v6 = vsub.f32 %v7264_v48, %v7292_v24  ;;  %v643_v10 = vmul.f32 0.125, %v619_v2  ;;  %v6200_v48 = vld [vmem:[#allocation11 + $0x3bc] ss:$28 sps:$4 sm:$0xff]   ;;  %v6203_v24 = vld [vmem:[#allocation11 + $0x3c4] ss:$28 sps:$4 sm:$0xff]  }
 0x1cb   :  { %v689_v9 = vcombine.low %v6659_v1, %v6661_v4  ;;  %v576_v12 = vadd.f32 %v575_v51, %v574_v57  ;;  %v624_v13 = vrot.slane %v623_v3, 1  ;;  %v580_v14 = vadd.f32 %v579_v56, %v578_v58 }
 0x1cc   :  { %v628_v17 = vrot.slane %v627_v8, 2  ;;  %v657_v18 = vsub.f32 %v643_v10, %v650_v5  ;;  %v7305_v52 = vsub.s32 %v694_v26, %v7193_v22 }
 0x1cd   :  { %v625_v19 = vadd.f32 %v624_v13, %v623_v3  ;;  %v7298_v21 = vmul.f32 0.125, %v576_v12  ;;  %v581_v27 = vrot.slane %v580_v14, 1  ;;  %v789_v13 = vld [vmem:[#allocation10] sm:$0xff] }
 0x1ce   :  { %v629_v28 = vadd.f32 %v628_v17, %v627_v8  ;;  %v664_v30 = vmax.f32 %v657_v18, 0.0  ;;  %v698_v62 = vrot.slane %v689_v9, %v7305_v52  ;;  %v798_v18 = vrot.slane %v789_v13, %v7201_v25 }
 0x1cf   :  { %v644_v35 = vmul.f32 0.125, %v625_v19  ;;  %v651_v37 = vmul.f32 %v7298_v21, %v7298_v21  ;;  %v744_v39 = vsub.f32 %v7266_v49, %v7298_v21  ;;  %v582_v41 = vadd.f32 %v581_v27, %v580_v14  ;;  %v667_v14 = vld [vmem:[#allocation8] sm:$0xff] }
 0x1d0   :  { %v630_v43 = vrot.slane %v629_v28, 1  ;;  %v672_v44 = vadd.f32 1e-05, %v664_v30  ;;  %v794_v19 = vrot.slane %v789_v13, %v7196_v23  ;;  %v806_v26 = vrot.slane %v789_v13, %v7215_v33 }
 0x1d1   :  { %v658_v45 = vsub.f32 %v644_v35, %v651_v37  ;;  %v6663_v46 = vpop.eup %6662  ;;  %v638_v50 = vmul.f32 0.125, %v582_v41  ;;  %v802_v27 = vrot.slane %v789_v13, %v7210_v31  ;;  %v739_v30 = vsub.f32 %v7207_v29, %v7254_v16 }
 0x1d2   :  { %v631_v47 = vadd.f32 %v630_v43, %v629_v28  ;;  %6666 = vrsqrt.f32 %v672_v44  ;;  %v814_v28 = vrot.slane %v789_v13, %v7230_v42  ;;  %v740_v35 = vsub.f32 %v7212_v32, %v7256_v20 }
 0x1d3   :  { %v665_v36 = vmax.f32 %v658_v45, 0.0  ;;  %v652_v57 = vmul.f32 %v638_v50, %v638_v50  ;;  %v745_v40 = vsub.f32 %v7286_v34, %v638_v50  ;;  %v742_v37 = vsub.f32 %v7241_v59, %v7278_v11 }
 0x1d4   :  { %v6665_v53 = vpop.eup %6664  ;;  %v645_v55 = vmul.f32 0.125, %v631_v47  ;;  %v810_v41 = vrot.slane %v789_v13, %v7224_v38  ;;  %v818_v32 = vrot.slane %v789_v13, %v7244_v60  ;;  %v6220_v13 = vld [vmem:[#allocation11 + $0x460] ss:$28 sps:$4 sm:$0xff]  }
 0x1d5   :  { %v690_v58 = vcombine.low %v6663_v46, %v6665_v53  ;;  %v673_v61 = vadd.f32 1e-05, %v665_v36 }
 0x1d6   :  { %v659_v49 = vsub.f32 %v645_v55, %v652_v57 }
 0x1d7   :  { %v705_v1 = vrot.slane %v690_v58, %v7305_v52  ;;  %6668 = vrsqrt.f32 %v673_v61 }
 0x1d8   :  { %v666_v2 = vmax.f32 %v659_v49, 0.0 }
 0x1d9   :  { %v720_v51 = vcombine.low %v698_v62, %v705_v1 }
 0x1da   :  { %v674_v3 = vadd.f32 1e-05, %v666_v2 }
 0x1db   :  { %v728_v12 = vrot.slane %v720_v51, %v7305_v52 }
 0x1dc   :  { %6670 = vrsqrt.f32 %v674_v3  ;;  %v6667_v22 = vpop.eup %6666  ;;  %v6206_v3 = vld [vmem:[#allocation11 + $0x3f4] ss:$28 sps:$4 sm:$0xff]  }
 0x1e1   :  { %v6669_v56 = vpop.eup %6668 }
 0x1e2   :  { %v691_v4 = vcombine.low %v6667_v22, %v6669_v56  ;;  %v6209_v22 = vld [vmem:[#allocation11 + $0x3fc] ss:$28 sps:$4 sm:$0xff]   ;;  %v6208_v56 = vld [vmem:[#allocation11 + $0x3f0] ss:$28 sps:$4 sm:$0xff]  }
 0x1e4   :  { %v712_v8 = vrot.slane %v691_v4, %v7305_v52  ;;  %v6211_v4 = vld [vmem:[#allocation11 + $0x3f8] ss:$28 sps:$4 sm:$0xff]  }
 0x1e6   :  { %v6671_v5 = vpop.eup %6670 }
 0x1e7   :  { %v719_v34 = vrot.slane %v6671_v5, %v7305_v52  ;;  %v6212_v5 = vld [vmem:[#allocation11 + $0x42c] ss:$28 sps:$4 sm:$0xff]  }
 0x1e9   :  { %v721_v10 = vcombine.low %v712_v8, %v719_v34  ;;  %v6215_v8 = vld [vmem:[#allocation11 + $0x434] ss:$28 sps:$4 sm:$0xff]   ;;  %v6214_v34 = vld [vmem:[#allocation11 + $0x428] ss:$28 sps:$4 sm:$0xff]  }
 0x1eb   :  { %v735_v9 = vrot.slane %v721_v10, %v7305_v52  ;;  %v6217_v10 = vld [vmem:[#allocation11 + $0x430] ss:$28 sps:$4 sm:$0xff]  }
 0x1ed   :  { %v736_v17 = vcombine.low %v728_v12, %v735_v9  ;;  %v6218_v12 = vld [vmem:[#allocation11 + $0x464] ss:$28 sps:$4 sm:$0xff]   ;;  %v6221_v9 = vld [vmem:[#allocation11 + $0x46c] ss:$28 sps:$4 sm:$0xff]  }
 0x1ef   :  { %v738_v21 = vmul.f32 %v736_v17, %v667_v14  ;;  %v6223_v14 = vld [vmem:[#allocation11 + $0x468] ss:$28 sps:$4 sm:$0xff]   ;;  %v6224_v17 = vld [vmem:[#allocation11 + $0x49c] ss:$28 sps:$4 sm:$0xff]  }
 0x1f1   :  { %v754_v43 = vrot.slane %v738_v21, %v7201_v25  ;;  %v750_v44 = vrot.slane %v738_v21, %v7196_v23  ;;  %v762_v45 = vrot.slane %v738_v21, %v7215_v33  ;;  %v758_v46 = vrot.slane %v738_v21, %v7210_v31 }
 0x1f2   :  { %v770_v47 = vrot.slane %v738_v21, %v7230_v42  ;;  %v766_v29 = vrot.slane %v738_v21, %v7224_v38  ;;  %v774_v16 = vrot.slane %v738_v21, %v7244_v60  ;;  %v6229_v21 = vld [vmem:[#allocation11 + $0x4a0] ss:$28 sps:$4 sm:$0xff]  }
 0x1f3   :  { %v783_v20 = vmul.f32 %v754_v43, %v740_v35  ;;  %v782_v59 = vmul.f32 %v750_v44, %v739_v30  ;;  %v785_v11 = vmul.f32 %v762_v45, %v742_v37  ;;  %v784_v50 = vmul.f32 %v758_v46, %v741_v7  ;;  %v6235_v30 = vld [vmem:[#allocation11 + $0x4d8] ss:$28 sps:$4 sm:$0xff]   ;;  %v6236_v35 = vld [vmem:[#allocation11 + $0x50c] ss:$28 sps:$4 sm:$0xff]   ;;  %v6242_v44 = vld [vmem:[#allocation11 + $0x544] ss:$28 sps:$4 sm:$0xff]  }
 0x1f4   :  { %v787_v36 = vmul.f32 %v770_v47, %v744_v39  ;;  %v786_v53 = vmul.f32 %v766_v29, %v743_v6  ;;  %v788_v55 = vmul.f32 %v774_v16, %v745_v40  ;;  %v6202_v39 = vld [vmem:[#allocation11 + $0x3b8] ss:$28 sps:$4 sm:$0xff]   ;;  %v6205_v40 = vld [vmem:[#allocation11 + $0x3c0] ss:$28 sps:$4 sm:$0xff]   ;;  %v6241_v43 = vld [vmem:[#allocation11 + $0x510] ss:$28 sps:$4 sm:$0xff]  }
 0x1f5   :  { %v827_v57 = vadd.f32 %v798_v18, %v783_v20  ;;  %v826_v58 = vadd.f32 %v794_v19, %v782_v59  ;;  %v7340_v61 = vadd.f32 %v802_v27, %v784_v50  ;;  %v829_v49 = vadd.f32 %v806_v26, %v785_v11  ;;  %v6227_v18 = vld [vmem:[#allocation11 + $0x4a4] ss:$28 sps:$4 sm:$0xff]   ;;  %v6226_v19 = vld [vmem:[#allocation11 + $0x498] ss:$28 sps:$4 sm:$0xff]   ;;  %v6245_v45 = vld [vmem:[#allocation11 + $0x54c] ss:$28 sps:$4 sm:$0xff]  }
 0x1f6   :  { %v7342_v62 = vadd.f32 %v814_v28, %v787_v36  ;;  %v7344_v1 = vadd.f32 %v810_v41, %v786_v53  ;;  %v7346_v2 = vadd.f32 %v818_v32, %v788_v55  ;;  %v6230_v26 = vld [vmem:[#allocation11 + $0x4d4] ss:$28 sps:$4 sm:$0xff]   ;;  %v6233_v27 = vld [vmem:[#allocation11 + $0x4dc] ss:$28 sps:$4 sm:$0xff]   ;;  %v6238_v41 = vld [vmem:[#allocation11 + $0x508] ss:$28 sps:$4 sm:$0xff]  }
 0x1f7   :  { %v7348_v51 = vmax.f32 %v827_v57, 0.0  ;;  %v7350_v7 = vmax.f32 %v826_v58, 0.0  ;;  %v7356_v6 = vmax.f32 %v829_v49, 0.0  ;;  %v6232_v28 = vld [vmem:[#allocation11 + $0x4d0] ss:$28 sps:$4 sm:$0xff]  }
 0x1f8   :  { %v6239_v37 = vld [vmem:[#allocation11 + $0x514] ss:$28 sps:$4 sm:$0xff]   ;;  %v6244_v46 = vld [vmem:[#allocation11 + $0x540] ss:$28 sps:$4 sm:$0xff]   ;;  %v6247_v47 = vld [vmem:[#allocation11 + $0x548] ss:$28 sps:$4 sm:$0xff]  }
 0x1f9   :  { %2173 = vmatprep.mubr.f32.mxu0 %v7348_v51  ;;  %2457 = vmatprep.mubr.f32.mxu1 %v7348_v51  ;;  %v6248_v29 = vld [vmem:[#allocation11 + $0x57c] ss:$28 sps:$4 sm:$0xff]   ;;  %v6251_v16 = vld [vmem:[#allocation11 + $0x584] ss:$28 sps:$4 sm:$0xff]   ;;  %v6254_v59 = vld [vmem:[#allocation11 + $0x5b4] ss:$28 sps:$4 sm:$0xff]  }
 0x1fa   :  { %2174 = vmatmul.mubr.f32.vlgmr.msra.gmra.mrb[0].mxu0 %v7350_v7  ;;  %2458 = vmatmul.mubr.f32.vlgmr.msra.gmra.mrb[8].mxu1 %v7350_v7  ;;  %v6250_v32 = vld [vmem:[#allocation11 + $0x578] ss:$28 sps:$4 sm:$0xff]   ;;  %v6253_v20 = vld [vmem:[#allocation11 + $0x580] ss:$28 sps:$4 sm:$0xff]   ;;  %v6256_v50 = vld [vmem:[#allocation11 + $0x5b0] ss:$28 sps:$4 sm:$0xff]  }
 0x1fb   :  { %4783 = vmatpush1.bf16.msra.mxu0 %v6196_v54  ;;  %5007 = vmatpush1.bf16.msra.mxu1 %v6199_v63  ;;  %v6257_v11 = vld [vmem:[#allocation11 + $0x5bc] ss:$28 sps:$4 sm:$0xff]   ;;  %v6260_v53 = vld [vmem:[#allocation11 + $0x5ec] ss:$28 sps:$4 sm:$0xff]   ;;  %v6263_v55 = vld [vmem:[#allocation11 + $0x5f4] ss:$28 sps:$4 sm:$0xff]  }
 0x1fc   :  { %2244 = vmatprep.mubr.f32.mxu0 %v7356_v6  ;;  %2528 = vmatprep.mubr.f32.mxu1 %v7356_v6  ;;  %v6259_v36 = vld [vmem:[#allocation11 + $0x5b8] ss:$28 sps:$4 sm:$0xff]   ;;  %v6262_v57 = vld [vmem:[#allocation11 + $0x5e8] ss:$28 sps:$4 sm:$0xff]   ;;  %v6265_v58 = vld [vmem:[#allocation11 + $0x5f0] ss:$28 sps:$4 sm:$0xff]  }
 0x1fd   :  { %4785 = vmatprep.subr.bf16.mxu0 %v6200_v48  ;;  %5009 = vmatprep.subr.bf16.mxu1 %v6203_v24  ;;  %v6266_v49 = vld [vmem:[#allocation11 + $0x624] ss:$28 sps:$4 sm:$0xff]   ;;  %v6269_v54 = vld [vmem:[#allocation11 + $0x62c] ss:$28 sps:$4 sm:$0xff]   ;;  %v6272_v24 = vld [vmem:[#allocation11 + $0x65c] ss:$28 sps:$4 sm:$0xff]  }
 0x1fe   :  { %v6268_v63 = vld [vmem:[#allocation11 + $0x620] ss:$28 sps:$4 sm:$0xff]   ;;  %v6271_v48 = vld [vmem:[#allocation11 + $0x628] ss:$28 sps:$4 sm:$0xff]  }
 0x1ff   :  { %4787 = vmatpush1.bf16.msra.mxu0 %v6202_v39  ;;  %5011 = vmatpush1.bf16.msra.mxu1 %v6205_v40  ;;  %v6275_v39 = vld [vmem:[#allocation11 + $0x664] ss:$28 sps:$4 sm:$0xff]   ;;  %v6274_v40 = vld [vmem:[#allocation11 + $0x658] ss:$28 sps:$4 sm:$0xff]  }
 0x200   :  { %4789 = vmatprep.subr.bf16.mxu0 %v6206_v3  ;;  %5013 = vmatprep.subr.bf16.mxu1 %v6209_v22  ;;  %v6277_v3 = vld [vmem:[#allocation11 + $0x660] ss:$28 sps:$4 sm:$0xff]   ;;  %v6278_v22 = vld [vmem:[#allocation11 + $0x694] ss:$28 sps:$4 sm:$0xff]  }
 0x203   :  { %4791 = vmatpush1.bf16.msra.mxu0 %v6208_v56  ;;  %5015 = vmatpush1.bf16.msra.mxu1 %v6211_v4  ;;  %v6281_v56 = vld [vmem:[#allocation11 + $0x69c] ss:$28 sps:$4 sm:$0xff]   ;;  %v6280_v4 = vld [vmem:[#allocation11 + $0x690] ss:$28 sps:$4 sm:$0xff]  }
 0x204   :  { %4793 = vmatprep.subr.bf16.mxu0 %v6212_v5  ;;  %5017 = vmatprep.subr.bf16.mxu1 %v6215_v8  ;;  %v6283_v5 = vld [vmem:[#allocation11 + $0x698] ss:$28 sps:$4 sm:$0xff]   ;;  %v6284_v8 = vld [vmem:[#allocation11 + $0x6cc] ss:$28 sps:$4 sm:$0xff]  }
 0x207   :  { %4795 = vmatpush1.bf16.msra.mxu0 %v6214_v34  ;;  %5019 = vmatpush1.bf16.msra.mxu1 %v6217_v10  ;;  %v6287_v34 = vld [vmem:[#allocation11 + $0x6d4] ss:$28 sps:$4 sm:$0xff]   ;;  %v6286_v10 = vld [vmem:[#allocation11 + $0x6c8] ss:$28 sps:$4 sm:$0xff]  }
 0x208   :  { %4797 = vmatprep.subr.bf16.mxu0 %v6218_v12  ;;  %5021 = vmatprep.subr.bf16.mxu1 %v6221_v9  ;;  %v6289_v12 = vld [vmem:[#allocation11 + $0x6d0] ss:$28 sps:$4 sm:$0xff]   ;;  %v6290_v9 = vld [vmem:[#allocation11 + $0x704] ss:$28 sps:$4 sm:$0xff]  }
 0x20b   :  { %4799 = vmatpush1.bf16.msra.mxu0 %v6220_v13  ;;  %5023 = vmatpush1.bf16.msra.mxu1 %v6223_v14  ;;  %v6293_v13 = vld [vmem:[#allocation11 + $0x70c] ss:$28 sps:$4 sm:$0xff]   ;;  %v6292_v14 = vld [vmem:[#allocation11 + $0x700] ss:$28 sps:$4 sm:$0xff]  }
 0x20c   :  { %4801 = vmatprep.subr.bf16.mxu0 %v6224_v17  ;;  %5025 = vmatprep.subr.bf16.mxu1 %v6227_v18  ;;  %v7361_v17 = vmax.f32 %v7340_v61, 0.0  ;;  %v6295_v18 = vld [vmem:[#allocation11 + $0x708] ss:$28 sps:$4 sm:$0xff]   ;;  %v6301_v61 = vld [vmem:[#allocation11 + $0x740] ss:$28 sps:$4 sm:$0xff]  }
 0x20f   :  { %4803 = vmatpush1.bf16.msra.mxu0 %v6226_v19  ;;  %5027 = vmatpush1.bf16.msra.mxu1 %v6229_v21  ;;  %v7364_v19 = vmax.f32 %v7342_v62, 0.0  ;;  %v6296_v21 = vld [vmem:[#allocation11 + $0x73c] ss:$28 sps:$4 sm:$0xff]   ;;  %v6304_v62 = vld [vmem:[#allocation11 + $0x770] ss:$28 sps:$4 sm:$0xff]  }
 0x210   :  { %4805 = vmatprep.subr.bf16.mxu0 %v6230_v26  ;;  %5029 = vmatprep.subr.bf16.mxu1 %v6233_v27  ;;  %v6299_v26 = vld [vmem:[#allocation11 + $0x744] ss:$28 sps:$4 sm:$0xff]   ;;  %v6298_v27 = vld [vmem:[#allocation11 + $0x738] ss:$28 sps:$4 sm:$0xff]  }
 0x213   :  { %4807 = vmatpush1.bf16.msra.mxu0 %v6232_v28  ;;  %5031 = vmatpush1.bf16.msra.mxu1 %v6235_v30  ;;  %v6302_v28 = vld [vmem:[#allocation11 + $0x774] ss:$28 sps:$4 sm:$0xff]   ;;  %v6305_v30 = vld [vmem:[#allocation11 + $0x77c] ss:$28 sps:$4 sm:$0xff]  }
 0x214   :  { %4809 = vmatprep.subr.bf16.mxu0 %v6236_v35  ;;  %5033 = vmatprep.subr.bf16.mxu1 %v6239_v37  ;;  %v6307_v35 = vld [vmem:[#allocation11 + $0x778] ss:$28 sps:$4 sm:$0xff]   ;;  %v6308_v37 = vld [vmem:[#allocation11 + $0x7ac] ss:$28 sps:$4 sm:$0xff]  }
 0x217   :  { %4811 = vmatpush1.bf16.msra.mxu0 %v6238_v41  ;;  %5035 = vmatpush1.bf16.msra.mxu1 %v6241_v43  ;;  %v6311_v41 = vld [vmem:[#allocation11 + $0x7b4] ss:$28 sps:$4 sm:$0xff]   ;;  %v6310_v43 = vld [vmem:[#allocation11 + $0x7a8] ss:$28 sps:$4 sm:$0xff]  }
 0x218   :  { %4813 = vmatprep.subr.bf16.mxu0 %v6242_v44  ;;  %5037 = vmatprep.subr.bf16.mxu1 %v6245_v45  ;;  %v6313_v44 = vld [vmem:[#allocation11 + $0x7b0] ss:$28 sps:$4 sm:$0xff]   ;;  %v6314_v45 = vld [vmem:[#allocation11 + $0x7e4] ss:$28 sps:$4 sm:$0xff]  }
 0x21b   :  { %4815 = vmatpush1.bf16.msra.mxu0 %v6244_v46  ;;  %5039 = vmatpush1.bf16.msra.mxu1 %v6247_v47  ;;  %v6317_v46 = vld [vmem:[#allocation11 + $0x7ec] ss:$28 sps:$4 sm:$0xff]   ;;  %v6316_v47 = vld [vmem:[#allocation11 + $0x7e0] ss:$28 sps:$4 sm:$0xff]  }
 0x21c   :  { %4817 = vmatprep.subr.bf16.mxu0 %v6248_v29  ;;  %5041 = vmatprep.subr.bf16.mxu1 %v6251_v16  ;;  %v6319_v29 = vld [vmem:[#allocation11 + $0x7e8] ss:$28 sps:$4 sm:$0xff]   ;;  %v6320_v16 = vld [vmem:[#allocation11 + $0x81c] ss:$28 sps:$4 sm:$0xff]  }
 0x21f   :  { %4819 = vmatpush1.bf16.msra.mxu0 %v6250_v32  ;;  %5043 = vmatpush1.bf16.msra.mxu1 %v6253_v20  ;;  %v6323_v32 = vld [vmem:[#allocation11 + $0x824] ss:$28 sps:$4 sm:$0xff]   ;;  %v6322_v20 = vld [vmem:[#allocation11 + $0x818] ss:$28 sps:$4 sm:$0xff]  }
 0x220   :  { %4821 = vmatprep.subr.bf16.mxu0 %v6254_v59  ;;  %5045 = vmatprep.subr.bf16.mxu1 %v6257_v11  ;;  %v6325_v59 = vld [vmem:[#allocation11 + $0x820] ss:$28 sps:$4 sm:$0xff]   ;;  %v6326_v11 = vld [vmem:[#allocation11 + $0x854] ss:$28 sps:$4 sm:$0xff]  }
 0x223   :  { %4823 = vmatpush1.bf16.msra.mxu0 %v6256_v50  ;;  %5047 = vmatpush1.bf16.msra.mxu1 %v6259_v36  ;;  %v6329_v50 = vld [vmem:[#allocation11 + $0x85c] ss:$28 sps:$4 sm:$0xff]   ;;  %v6328_v36 = vld [vmem:[#allocation11 + $0x850] ss:$28 sps:$4 sm:$0xff]  }
 0x224   :  { %4825 = vmatprep.subr.bf16.mxu0 %v6260_v53  ;;  %5049 = vmatprep.subr.bf16.mxu1 %v6263_v55  ;;  %v6331_v53 = vld [vmem:[#allocation11 + $0x858] ss:$28 sps:$4 sm:$0xff]   ;;  %v6332_v55 = vld [vmem:[#allocation11 + $0x88c] ss:$28 sps:$4 sm:$0xff]  }
 0x227   :  { %4827 = vmatpush1.bf16.msra.mxu0 %v6262_v57  ;;  %5051 = vmatpush1.bf16.msra.mxu1 %v6265_v58  ;;  %v6335_v57 = vld [vmem:[#allocation11 + $0x894] ss:$28 sps:$4 sm:$0xff]   ;;  %v6334_v58 = vld [vmem:[#allocation11 + $0x888] ss:$28 sps:$4 sm:$0xff]  }
 0x228   :  { %4829 = vmatprep.subr.bf16.mxu0 %v6266_v49  ;;  %5053 = vmatprep.subr.bf16.mxu1 %v6269_v54  ;;  %v6337_v49 = vld [vmem:[#allocation11 + $0x890] ss:$28 sps:$4 sm:$0xff]   ;;  %v6338_v54 = vld [vmem:[#allocation11 + $0x8c4] ss:$28 sps:$4 sm:$0xff]  }
 0x22b   :  { %4831 = vmatpush1.bf16.msra.mxu0 %v6268_v63  ;;  %5055 = vmatpush1.bf16.msra.mxu1 %v6271_v48  ;;  %v6341_v63 = vld [vmem:[#allocation11 + $0x8cc] ss:$28 sps:$4 sm:$0xff]   ;;  %v6340_v48 = vld [vmem:[#allocation11 + $0x8c0] ss:$28 sps:$4 sm:$0xff]  }
 0x22c   :  { %4833 = vmatprep.subr.bf16.mxu0 %v6272_v24  ;;  %5057 = vmatprep.subr.bf16.mxu1 %v6275_v39  ;;  %v6343_v24 = vld [vmem:[#allocation11 + $0x8c8] ss:$28 sps:$4 sm:$0xff]   ;;  %v6344_v39 = vld [vmem:[#allocation11 + $0x8fc] ss:$28 sps:$4 sm:$0xff]  }
 0x22f   :  { %4835 = vmatpush1.bf16.msra.mxu0 %v6274_v40  ;;  %5059 = vmatpush1.bf16.msra.mxu1 %v6277_v3  ;;  %v6347_v40 = vld [vmem:[#allocation11 + $0x904] ss:$28 sps:$4 sm:$0xff]   ;;  %v6346_v3 = vld [vmem:[#allocation11 + $0x8f8] ss:$28 sps:$4 sm:$0xff]  }
 0x230   :  { %4837 = vmatprep.subr.bf16.mxu0 %v6278_v22  ;;  %5061 = vmatprep.subr.bf16.mxu1 %v6281_v56  ;;  %v6349_v22 = vld [vmem:[#allocation11 + $0x900] ss:$28 sps:$4 sm:$0xff]   ;;  %v6350_v56 = vld [vmem:[#allocation11 + $0x934] ss:$28 sps:$4 sm:$0xff]  }
 0x233   :  { %4839 = vmatpush1.bf16.msra.mxu0 %v6280_v4  ;;  %5063 = vmatpush1.bf16.msra.mxu1 %v6283_v5  ;;  %v6353_v4 = vld [vmem:[#allocation11 + $0x93c] ss:$28 sps:$4 sm:$0xff]   ;;  %v6352_v5 = vld [vmem:[#allocation11 + $0x930] ss:$28 sps:$4 sm:$0xff]  }
 0x234   :  { %4841 = vmatprep.subr.bf16.mxu0 %v6284_v8  ;;  %5065 = vmatprep.subr.bf16.mxu1 %v6287_v34  ;;  %v6355_v8 = vld [vmem:[#allocation11 + $0x938] ss:$28 sps:$4 sm:$0xff]   ;;  %v6356_v34 = vld [vmem:[#allocation11 + $0x96c] ss:$28 sps:$4 sm:$0xff]  }
 0x237   :  { %4843 = vmatpush1.bf16.msra.mxu0 %v6286_v10  ;;  %5067 = vmatpush1.bf16.msra.mxu1 %v6289_v12  ;;  %v6359_v10 = vld [vmem:[#allocation11 + $0x974] ss:$28 sps:$4 sm:$0xff]   ;;  %v6358_v12 = vld [vmem:[#allocation11 + $0x968] ss:$28 sps:$4 sm:$0xff]  }
 0x238   :  { %4845 = vmatprep.subr.bf16.mxu0 %v6290_v9  ;;  %5069 = vmatprep.subr.bf16.mxu1 %v6293_v13  ;;  %v6361_v9 = vld [vmem:[#allocation11 + $0x970] ss:$28 sps:$4 sm:$0xff]   ;;  %v6362_v13 = vld [vmem:[#allocation11 + $0x9a4] ss:$28 sps:$4 sm:$0xff]  }
 0x23a   :  { %2245 = vmatmul.mubr.f32.vlgmr.msra.gmra.mrb[0].mxu0 %v7361_v17  ;;  %2529 = vmatmul.mubr.f32.vlgmr.msra.gmra.mrb[8].mxu1 %v7361_v17 }
 0x23b   :  { %4847 = vmatpush1.bf16.msra.mxu0 %v6292_v14  ;;  %2315 = vmatprep.mubr.f32.mxu0 %v7364_v19  ;;  %v6365_v14 = vld [vmem:[#allocation11 + $0x9ac] ss:$28 sps:$4 sm:$0xff]  }
 0x23c   :  { %5071 = vmatpush1.bf16.msra.mxu1 %v6295_v18  ;;  %2599 = vmatprep.mubr.f32.mxu1 %v7364_v19  ;;  %v6364_v18 = vld [vmem:[#allocation11 + $0x9a0] ss:$28 sps:$4 sm:$0xff]  }
 0x23d   :  { %4849 = vmatprep.subr.bf16.mxu0 %v6296_v21  ;;  %5073 = vmatprep.subr.bf16.mxu1 %v6299_v26  ;;  %v6367_v21 = vld [vmem:[#allocation11 + $0x9a8] ss:$28 sps:$4 sm:$0xff]   ;;  %v6368_v26 = vld [vmem:[#allocation11 + $0x9dc] ss:$28 sps:$4 sm:$0xff]  }
 0x23f   :  { %4851 = vmatpush1.bf16.msra.mxu0 %v6298_v27  ;;  %v6371_v27 = vld [vmem:[#allocation11 + $0x9e4] ss:$28 sps:$4 sm:$0xff]  }
 0x240   :  { %5075 = vmatpush1.bf16.msra.mxu1 %v6301_v61  ;;  %4853 = vmatprep.subr.bf16.mxu0 %v6302_v28  ;;  %v6370_v61 = vld [vmem:[#allocation11 + $0x9d8] ss:$28 sps:$4 sm:$0xff]   ;;  %v6373_v28 = vld [vmem:[#allocation11 + $0x9e0] ss:$28 sps:$4 sm:$0xff]  }
 0x241   :  { %5077 = vmatprep.subr.bf16.mxu1 %v6305_v30  ;;  %v6374_v30 = vld [vmem:[#allocation11 + $0xa14] ss:$28 sps:$4 sm:$0xff]  }
 0x243   :  { %4855 = vmatpush1.bf16.msra.mxu0 %v6304_v62  ;;  %v6377_v62 = vld [vmem:[#allocation11 + $0xa1c] ss:$28 sps:$4 sm:$0xff]  }
 0x244   :  { %5079 = vmatpush1.bf16.msra.mxu1 %v6307_v35  ;;  %4857 = vmatprep.subr.bf16.mxu0 %v6308_v37  ;;  %v6376_v35 = vld [vmem:[#allocation11 + $0xa10] ss:$28 sps:$4 sm:$0xff]   ;;  %v6379_v37 = vld [vmem:[#allocation11 + $0xa18] ss:$28 sps:$4 sm:$0xff]  }
 0x245   :  { %5081 = vmatprep.subr.bf16.mxu1 %v6311_v41  ;;  %v6380_v41 = vld [vmem:[#allocation11 + $0xa4c] ss:$28 sps:$4 sm:$0xff]  }
 0x247   :  { %4859 = vmatpush1.bf16.msra.mxu0 %v6310_v43  ;;  %v6383_v43 = vld [vmem:[#allocation11 + $0xa54] ss:$28 sps:$4 sm:$0xff]  }
 0x248   :  { %5083 = vmatpush1.bf16.msra.mxu1 %v6313_v44  ;;  %4861 = vmatprep.subr.bf16.mxu0 %v6314_v45  ;;  %v6382_v44 = vld [vmem:[#allocation11 + $0xa48] ss:$28 sps:$4 sm:$0xff]   ;;  %v6385_v45 = vld [vmem:[#allocation11 + $0xa50] ss:$28 sps:$4 sm:$0xff]  }
 0x249   :  { %5085 = vmatprep.subr.bf16.mxu1 %v6317_v46  ;;  %v6386_v46 = vld [vmem:[#allocation11 + $0xa84] ss:$28 sps:$4 sm:$0xff]  }
 0x24b   :  { %4863 = vmatpush1.bf16.msra.mxu0 %v6316_v47  ;;  %v6389_v47 = vld [vmem:[#allocation11 + $0xa8c] ss:$28 sps:$4 sm:$0xff]  }
 0x24c   :  { %5087 = vmatpush1.bf16.msra.mxu1 %v6319_v29  ;;  %4865 = vmatprep.subr.bf16.mxu0 %v6320_v16  ;;  %v6388_v29 = vld [vmem:[#allocation11 + $0xa80] ss:$28 sps:$4 sm:$0xff]   ;;  %v7371_v16 = vmax.f32 %v7344_v1, 0.0  ;;  %v6400_v1 = vld [vmem:[#allocation11 + $0xaf0] ss:$28 sps:$4 sm:$0xff]  }
 0x24d   :  { %5089 = vmatprep.subr.bf16.mxu1 %v6323_v32  ;;  %v6391_v32 = vld [vmem:[#allocation11 + $0xa88] ss:$28 sps:$4 sm:$0xff]  }
 0x24f   :  { %4867 = vmatpush1.bf16.msra.mxu0 %v6322_v20  ;;  %v6392_v20 = vld [vmem:[#allocation11 + $0xabc] ss:$28 sps:$4 sm:$0xff]  }
 0x250   :  { %5091 = vmatpush1.bf16.msra.mxu1 %v6325_v59  ;;  %4869 = vmatprep.subr.bf16.mxu0 %v6326_v11  ;;  %v6395_v59 = vld [vmem:[#allocation11 + $0xac4] ss:$28 sps:$4 sm:$0xff]   ;;  %v6394_v11 = vld [vmem:[#allocation11 + $0xab8] ss:$28 sps:$4 sm:$0xff]  }
 0x251   :  { %5093 = vmatprep.subr.bf16.mxu1 %v6329_v50  ;;  %v6397_v50 = vld [vmem:[#allocation11 + $0xac0] ss:$28 sps:$4 sm:$0xff]  }
 0x253   :  { %4871 = vmatpush1.bf16.msra.mxu0 %v6328_v36  ;;  %v6398_v36 = vld [vmem:[#allocation11 + $0xaf4] ss:$28 sps:$4 sm:$0xff]  }
 0x254   :  { %5095 = vmatpush1.bf16.msra.mxu1 %v6331_v53  ;;  %4873 = vmatprep.subr.bf16.mxu0 %v6332_v55  ;;  %v6401_v53 = vld [vmem:[#allocation11 + $0xafc] ss:$28 sps:$4 sm:$0xff]  }
 0x255   :  { %5097 = vmatprep.subr.bf16.mxu1 %v6335_v57  ;;  %v6403_v55 = vld [vmem:[#allocation11 + $0xaf8] ss:$28 sps:$4 sm:$0xff]   ;;  %v6404_v57 = vld [vmem:[#allocation11 + $0xb2c] ss:$28 sps:$4 sm:$0xff]  }
 0x257   :  { %4875 = vmatpush1.bf16.msra.mxu0 %v6334_v58  ;;  %v6407_v58 = vld [vmem:[#allocation11 + $0xb34] ss:$28 sps:$4 sm:$0xff]  }
 0x258   :  { %5099 = vmatpush1.bf16.msra.mxu1 %v6337_v49  ;;  %4877 = vmatprep.subr.bf16.mxu0 %v6338_v54  ;;  %v6406_v49 = vld [vmem:[#allocation11 + $0xb28] ss:$28 sps:$4 sm:$0xff]   ;;  %v6409_v54 = vld [vmem:[#allocation11 + $0xb30] ss:$28 sps:$4 sm:$0xff]  }
 0x259   :  { %5101 = vmatprep.subr.bf16.mxu1 %v6341_v63  ;;  %v6410_v63 = vld [vmem:[#allocation11 + $0xb64] ss:$28 sps:$4 sm:$0xff]  }
 0x25b   :  { %4879 = vmatpush1.bf16.msra.mxu0 %v6340_v48  ;;  %v6413_v48 = vld [vmem:[#allocation11 + $0xb6c] ss:$28 sps:$4 sm:$0xff]  }
 0x25c   :  { %5103 = vmatpush1.bf16.msra.mxu1 %v6343_v24  ;;  %4881 = vmatprep.subr.bf16.mxu0 %v6344_v39  ;;  %v6412_v24 = vld [vmem:[#allocation11 + $0xb60] ss:$28 sps:$4 sm:$0xff]   ;;  %v6415_v39 = vld [vmem:[#allocation11 + $0xb68] ss:$28 sps:$4 sm:$0xff]  }
 0x25d   :  { %5105 = vmatprep.subr.bf16.mxu1 %v6347_v40  ;;  %v6416_v40 = vld [vmem:[#allocation11 + $0xb9c] ss:$28 sps:$4 sm:$0xff]  }
 0x25f   :  { %4883 = vmatpush1.bf16.msra.mxu0 %v6346_v3  ;;  %v6419_v3 = vld [vmem:[#allocation11 + $0xba4] ss:$28 sps:$4 sm:$0xff]  }
 0x260   :  { %5107 = vmatpush1.bf16.msra.mxu1 %v6349_v22  ;;  %4885 = vmatprep.subr.bf16.mxu0 %v6350_v56  ;;  %v6418_v22 = vld [vmem:[#allocation11 + $0xb98] ss:$28 sps:$4 sm:$0xff]   ;;  %v6421_v56 = vld [vmem:[#allocation11 + $0xba0] ss:$28 sps:$4 sm:$0xff]  }
 0x261   :  { %5109 = vmatprep.subr.bf16.mxu1 %v6353_v4  ;;  %v6422_v4 = vld [vmem:[#allocation11 + $0xbd4] ss:$28 sps:$4 sm:$0xff]  }
 0x263   :  { %4887 = vmatpush1.bf16.msra.mxu0 %v6352_v5  ;;  %v6425_v5 = vld [vmem:[#allocation11 + $0xbdc] ss:$28 sps:$4 sm:$0xff]  }
 0x264   :  { %5111 = vmatpush1.bf16.msra.mxu1 %v6355_v8  ;;  %4889 = vmatprep.subr.bf16.mxu0 %v6356_v34  ;;  %v6424_v8 = vld [vmem:[#allocation11 + $0xbd0] ss:$28 sps:$4 sm:$0xff]   ;;  %v6427_v34 = vld [vmem:[#allocation11 + $0xbd8] ss:$28 sps:$4 sm:$0xff]  }
 0x265   :  { %5113 = vmatprep.subr.bf16.mxu1 %v6359_v10  ;;  %v6428_v10 = vld [vmem:[#allocation11 + $0xc0c] ss:$28 sps:$4 sm:$0xff]  }
 0x267   :  { %4891 = vmatpush1.bf16.msra.mxu0 %v6358_v12  ;;  %v6431_v12 = vld [vmem:[#allocation11 + $0xc14] ss:$28 sps:$4 sm:$0xff]  }
 0x268   :  { %5115 = vmatpush1.bf16.msra.mxu1 %v6361_v9  ;;  %4893 = vmatprep.subr.bf16.mxu0 %v6362_v13  ;;  %v6430_v9 = vld [vmem:[#allocation11 + $0xc08] ss:$28 sps:$4 sm:$0xff]   ;;  %v6433_v13 = vld [vmem:[#allocation11 + $0xc10] ss:$28 sps:$4 sm:$0xff]  }
 0x269   :  { %5117 = vmatprep.subr.bf16.mxu1 %v6365_v14  ;;  %v6434_v14 = vld [vmem:[#allocation11 + $0x14] ss:$28 sps:$4 sm:$0xff]  }
 0x26b   :  { %4895 = vmatpush1.bf16.msra.mxu0 %v6364_v18  ;;  %v6437_v18 = vld [vmem:[#allocation11 + $0x1d8] ss:$28 sps:$4 sm:$0xff]  }
 0x26c   :  { %5119 = vmatpush1.bf16.msra.mxu1 %v6367_v21  ;;  %4897 = vmatprep.subr.bf16.mxu0 %v6368_v26  ;;  %v6436_v21 = vld [vmem:[#allocation11 + $0x10] ss:$28 sps:$4 sm:$0xff]   ;;  %v7378_v26 = vmax.f32 %v7346_v2, 0.0  ;;  %v6447_v2 = vld [vmem:[#allocation11 + $0x248] ss:$28 sps:$4 sm:$0xff]  }
 0x26d   :  { %5121 = vmatprep.subr.bf16.mxu1 %v6371_v27  ;;  %v6438_v27 = vld [vmem:[#allocation11 + $0x18] ss:$28 sps:$4 sm:$0xff]  }
 0x26f   :  { %4899 = vmatpush1.bf16.msra.mxu0 %v6370_v61  ;;  %v6439_v61 = vld [vmem:[#allocation11 + $0x4c] ss:$28 sps:$4 sm:$0xff]  }
 0x270   :  { %5123 = vmatpush1.bf16.msra.mxu1 %v6373_v28  ;;  %4901 = vmatprep.subr.bf16.mxu0 %v6374_v30  ;;  %v6442_v28 = vld [vmem:[#allocation11 + $0x210] ss:$28 sps:$4 sm:$0xff]   ;;  %v6441_v30 = vld [vmem:[#allocation11 + $0x48] ss:$28 sps:$4 sm:$0xff]  }
 0x271   :  { %5125 = vmatprep.subr.bf16.mxu1 %v6377_v62  ;;  %v6443_v62 = vld [vmem:[#allocation11 + $0x50] ss:$28 sps:$4 sm:$0xff]  }
 0x273   :  { %4903 = vmatpush1.bf16.msra.mxu0 %v6376_v35  ;;  %v6444_v35 = vld [vmem:[#allocation11 + $0x84] ss:$28 sps:$4 sm:$0xff]  }
 0x274   :  { %5127 = vmatpush1.bf16.msra.mxu1 %v6379_v37  ;;  %4905 = vmatprep.subr.bf16.mxu0 %v6380_v41  ;;  %v6446_v37 = vld [vmem:[#allocation11 + $0x80] ss:$28 sps:$4 sm:$0xff]   ;;  %v6448_v41 = vld [vmem:[#allocation11 + $0x88] ss:$28 sps:$4 sm:$0xff]  }
 0x275   :  { %5129 = vmatprep.subr.bf16.mxu1 %v6383_v43  ;;  %v6449_v43 = vld [vmem:[#allocation11 + $0xbc] ss:$28 sps:$4 sm:$0xff]  }
 0x277   :  { %4907 = vmatpush1.bf16.msra.mxu0 %v6382_v44  ;;  %v6452_v44 = vld [vmem:[#allocation11 + $0x280] ss:$28 sps:$4 sm:$0xff]  }
 0x278   :  { %5131 = vmatpush1.bf16.msra.mxu1 %v6385_v45  ;;  %4909 = vmatprep.subr.bf16.mxu0 %v6386_v46  ;;  %v6451_v45 = vld [vmem:[#allocation11 + $0xb8] ss:$28 sps:$4 sm:$0xff]   ;;  %v6453_v46 = vld [vmem:[#allocation11 + $0xc0] ss:$28 sps:$4 sm:$0xff]  }
 0x279   :  { %5133 = vmatprep.subr.bf16.mxu1 %v6389_v47  ;;  %v6454_v47 = vld [vmem:[#allocation11 + $0xf4] ss:$28 sps:$4 sm:$0xff]  }
 0x27a   :  { %2316 = vmatmul.mubr.f32.vlgmr.msra.gmra.mrb[0].mxu0 %v7371_v16 }
 0x27b   :  { %2600 = vmatmul.mubr.f32.vlgmr.msra.gmra.mrb[8].mxu1 %v7371_v16  ;;  %4911 = vmatpush1.bf16.msra.mxu0 %v6388_v29  ;;  %v6457_v29 = vld [vmem:[#allocation11 + $0x2b8] ss:$28 sps:$4 sm:$0xff]  }
 0x27c   :  { %5135 = vmatpush1.bf16.msra.mxu1 %v6391_v32  ;;  %4913 = vmatprep.subr.bf16.mxu0 %v6392_v20  ;;  %v6458_v32 = vld [vmem:[#allocation11 + $0xf8] ss:$28 sps:$4 sm:$0xff]   ;;  %v6459_v20 = vld [vmem:[#allocation11 + $0x12c] ss:$28 sps:$4 sm:$0xff]  }
 0x27d   :  { %5137 = vmatprep.subr.bf16.mxu1 %v6395_v59  ;;  %2386 = vmatprep.mubr.f32.mxu0 %v6979_v0  ;;  %v6462_v59 = vld [vmem:[#allocation11 + $0x2f0] ss:$28 sps:$4 sm:$0xff]  }
 0x27e   :  { %2670 = vmatprep.mubr.f32.mxu1 %v6979_v0 }
 0x27f   :  { %4915 = vmatpush1.bf16.msra.mxu0 %v6394_v11  ;;  %v6461_v11 = vld [vmem:[#allocation11 + $0x128] ss:$28 sps:$4 sm:$0xff]  }
 0x280   :  { %5139 = vmatpush1.bf16.msra.mxu1 %v6397_v50  ;;  %4917 = vmatprep.subr.bf16.mxu0 %v6398_v36  ;;  %v6463_v50 = vld [vmem:[#allocation11 + $0x130] ss:$28 sps:$4 sm:$0xff]   ;;  %v6464_v36 = vld [vmem:[#allocation11 + $0x164] ss:$28 sps:$4 sm:$0xff]  }
 0x281   :  { %5141 = vmatprep.subr.bf16.mxu1 %v6401_v53  ;;  %v6467_v53 = vld [vmem:[#allocation11 + $0x328] ss:$28 sps:$4 sm:$0xff]  }
 0x283   :  { %4919 = vmatpush1.bf16.msra.mxu0 %v6400_v1  ;;  %v6466_v1 = vld [vmem:[#allocation11 + $0x160] ss:$28 sps:$4 sm:$0xff]  }
 0x284   :  { %5143 = vmatpush1.bf16.msra.mxu1 %v6403_v55  ;;  %4921 = vmatprep.subr.bf16.mxu0 %v6404_v57  ;;  %v6468_v55 = vld [vmem:[#allocation11 + $0x168] ss:$28 sps:$4 sm:$0xff]   ;;  %v6469_v57 = vld [vmem:[#allocation11 + $0x19c] ss:$28 sps:$4 sm:$0xff]  }
 0x285   :  { %5145 = vmatprep.subr.bf16.mxu1 %v6407_v58  ;;  %v6472_v58 = vld [vmem:[#allocation11 + $0x360] ss:$28 sps:$4 sm:$0xff]  }
 0x287   :  { %4923 = vmatpush1.bf16.msra.mxu0 %v6406_v49  ;;  %v6471_v49 = vld [vmem:[#allocation11 + $0x198] ss:$28 sps:$4 sm:$0xff]  }
 0x288   :  { %5147 = vmatpush1.bf16.msra.mxu1 %v6409_v54  ;;  %4925 = vmatprep.subr.bf16.mxu0 %v6410_v63  ;;  %v6473_v54 = vld [vmem:[#allocation11 + $0x1a0] ss:$28 sps:$4 sm:$0xff]   ;;  %v6474_v63 = vld [vmem:[#allocation11 + $0x1d4] ss:$28 sps:$4 sm:$0xff]  }
 0x289   :  { %5149 = vmatprep.subr.bf16.mxu1 %v6413_v48  ;;  %v6477_v48 = vld [vmem:[#allocation11 + $0x558] ss:$28 sps:$4 sm:$0xff]  }
 0x28b   :  { %4927 = vmatpush1.bf16.msra.mxu0 %v6412_v24  ;;  %v6476_v24 = vld [vmem:[#allocation11 + $0x1d0] ss:$28 sps:$4 sm:$0xff]  }
 0x28c   :  { %5151 = vmatpush1.bf16.msra.mxu1 %v6415_v39  ;;  %4929 = vmatprep.subr.bf16.mxu0 %v6416_v40  ;;  %v6478_v39 = vld [vmem:[#allocation11 + $0x398] ss:$28 sps:$4 sm:$0xff]   ;;  %v6479_v40 = vld [vmem:[#allocation11 + $0x20c] ss:$28 sps:$4 sm:$0xff]  }
 0x28d   :  { %5153 = vmatprep.subr.bf16.mxu1 %v6419_v3  ;;  %v6482_v3 = vld [vmem:[#allocation11 + $0x590] ss:$28 sps:$4 sm:$0xff]  }
 0x28f   :  { %4931 = vmatpush1.bf16.msra.mxu0 %v6418_v22  ;;  %v6481_v22 = vld [vmem:[#allocation11 + $0x208] ss:$28 sps:$4 sm:$0xff]  }
 0x290   :  { %5155 = vmatpush1.bf16.msra.mxu1 %v6421_v56  ;;  %4933 = vmatprep.subr.bf16.mxu0 %v6422_v4  ;;  %v6483_v56 = vld [vmem:[#allocation11 + $0x3d0] ss:$28 sps:$4 sm:$0xff]   ;;  %v6484_v4 = vld [vmem:[#allocation11 + $0x244] ss:$28 sps:$4 sm:$0xff]  }
 0x291   :  { %5157 = vmatprep.subr.bf16.mxu1 %v6425_v5  ;;  %v6487_v5 = vld [vmem:[#allocation11 + $0x5c8] ss:$28 sps:$4 sm:$0xff]  }
 0x293   :  { %4935 = vmatpush1.bf16.msra.mxu0 %v6424_v8  ;;  %v6486_v8 = vld [vmem:[#allocation11 + $0x240] ss:$28 sps:$4 sm:$0xff]  }
 0x294   :  { %5159 = vmatpush1.bf16.msra.mxu1 %v6427_v34  ;;  %4937 = vmatprep.subr.bf16.mxu0 %v6428_v10  ;;  %v6488_v34 = vld [vmem:[#allocation11 + $0x408] ss:$28 sps:$4 sm:$0xff]   ;;  %v6489_v10 = vld [vmem:[#allocation11 + $0x27c] ss:$28 sps:$4 sm:$0xff]  }
 0x295   :  { %5161 = vmatprep.subr.bf16.mxu1 %v6431_v12  ;;  %v6492_v12 = vld [vmem:[#allocation11 + $0x600] ss:$28 sps:$4 sm:$0xff]  }
 0x297   :  { %4939 = vmatpush1.bf16.msra.mxu0 %v6430_v9  ;;  %v6491_v9 = vld [vmem:[#allocation11 + $0x278] ss:$28 sps:$4 sm:$0xff]  }
 0x298   :  { %5163 = vmatpush1.bf16.msra.mxu1 %v6433_v13  ;;  %5165 = vmatprep.subr.bf16.mxu0 %v6434_v14  ;;  %v6493_v13 = vld [vmem:[#allocation11 + $0x440] ss:$28 sps:$4 sm:$0xff]   ;;  %v6494_v14 = vld [vmem:[#allocation11 + $0x2b4] ss:$28 sps:$4 sm:$0xff]  }
 0x299   :  { %5389 = vmatprep.subr.bf16.mxu1 %v6437_v18  ;;  %v6497_v18 = vld [vmem:[#allocation11 + $0x638] ss:$28 sps:$4 sm:$0xff]  }
 0x29a   :  { %2387 = vmatmul.mubr.f32.vlgmr.msra.gmra.mrb[0].mxu0 %v7378_v26 }
 0x29b   :  { %2671 = vmatmul.mubr.f32.vlgmr.msra.gmra.mrb[8].mxu1 %v7378_v26  ;;  %5167 = vmatpush1.bf16.msra.mxu0 %v6436_v21  ;;  %v6496_v21 = vld [vmem:[#allocation11 + $0x2b0] ss:$28 sps:$4 sm:$0xff]  }
 0x29c   :  { %2741 = vmatprep.mubr.f32.mxu0 %v7348_v51  ;;  %5391 = vmatpush3.bf16.msra.mxu1 %v6438_v27  ;;  %v6498_v27 = vld [vmem:[#allocation11 + $0x478] ss:$28 sps:$4 sm:$0xff]  }
 0x29d   :  { %3025 = vmatprep.mubr.f32.mxu1 %v7348_v51  ;;  %5169 = vmatprep.subr.bf16.mxu0 %v6439_v61  ;;  %v6456_v51 = vld [vmem:[#allocation11 + $0xf0] ss:$28 sps:$4 sm:$0xff]  }
 0x29e   :  { %5393 = vmatprep.subr.bf16.mxu1 %v6442_v28  ;;  %v6499_v61 = vld [vmem:[#allocation11 + $0x2ec] ss:$28 sps:$4 sm:$0xff]  }
 0x29f   :  { %5171 = vmatpush1.bf16.msra.mxu0 %v6441_v30  ;;  %v6502_v28 = vld [vmem:[#allocation11 + $0x670] ss:$28 sps:$4 sm:$0xff]   ;;  %v6501_v30 = vld [vmem:[#allocation11 + $0x2e8] ss:$28 sps:$4 sm:$0xff]  }
 0x2a0   :  { %5395 = vmatpush3.bf16.msra.mxu1 %v6443_v62  ;;  %5173 = vmatprep.subr.bf16.mxu0 %v6444_v35  ;;  %v6503_v62 = vld [vmem:[#allocation11 + $0x4b0] ss:$28 sps:$4 sm:$0xff]   ;;  %v6504_v35 = vld [vmem:[#allocation11 + $0x324] ss:$28 sps:$4 sm:$0xff]  }
 0x2a1   :  { %5397 = vmatprep.subr.bf16.mxu1 %v6447_v2  ;;  %v6507_v2 = vld [vmem:[#allocation11 + $0x6a8] ss:$28 sps:$4 sm:$0xff]  }
 0x2a3   :  { %5175 = vmatpush1.bf16.msra.mxu0 %v6446_v37  ;;  %v6506_v37 = vld [vmem:[#allocation11 + $0x320] ss:$28 sps:$4 sm:$0xff]  }
 0x2a4   :  { %5399 = vmatpush3.bf16.msra.mxu1 %v6448_v41  ;;  %5177 = vmatprep.subr.bf16.mxu0 %v6449_v43  ;;  %v6508_v41 = vld [vmem:[#allocation11 + $0x4e8] ss:$28 sps:$4 sm:$0xff]   ;;  %v6509_v43 = vld [vmem:[#allocation11 + $0x35c] ss:$28 sps:$4 sm:$0xff]  }
 0x2a5   :  { %5401 = vmatprep.subr.bf16.mxu1 %v6452_v44  ;;  %v6512_v44 = vld [vmem:[#allocation11 + $0x6e0] ss:$28 sps:$4 sm:$0xff]  }
 0x2a7   :  { %5179 = vmatpush1.bf16.msra.mxu0 %v6451_v45  ;;  %v6511_v45 = vld [vmem:[#allocation11 + $0x358] ss:$28 sps:$4 sm:$0xff]  }
 0x2a8   :  { %5403 = vmatpush3.bf16.msra.mxu1 %v6453_v46  ;;  %5181 = vmatprep.subr.bf16.mxu0 %v6454_v47  ;;  %v6513_v46 = vld [vmem:[#allocation11 + $0x520] ss:$28 sps:$4 sm:$0xff]   ;;  %v6514_v47 = vld [vmem:[#allocation11 + $0x394] ss:$28 sps:$4 sm:$0xff]  }
 0x2a9   :  { %5405 = vmatprep.subr.bf16.mxu1 %v6457_v29  ;;  %v6517_v29 = vld [vmem:[#allocation11 + $0x8d8] ss:$28 sps:$4 sm:$0xff]  }
 0x2ab   :  { %5183 = vmatpush1.bf16.msra.mxu0 %v6456_v51  ;;  %v6516_v51 = vld [vmem:[#allocation11 + $0x390] ss:$28 sps:$4 sm:$0xff]  }
 0x2ac   :  { %5407 = vmatpush3.bf16.msra.mxu1 %v6458_v32  ;;  %5185 = vmatprep.subr.bf16.mxu0 %v6459_v20  ;;  %v6518_v32 = vld [vmem:[#allocation11 + $0x718] ss:$28 sps:$4 sm:$0xff]   ;;  %v6519_v20 = vld [vmem:[#allocation11 + $0x3cc] ss:$28 sps:$4 sm:$0xff]  }
 0x2ad   :  { %5409 = vmatprep.subr.bf16.mxu1 %v6462_v59  ;;  %v6522_v59 = vld [vmem:[#allocation11 + $0x910] ss:$28 sps:$4 sm:$0xff]  }
 0x2af   :  { %5187 = vmatpush1.bf16.msra.mxu0 %v6461_v11  ;;  %v6521_v11 = vld [vmem:[#allocation11 + $0x3c8] ss:$28 sps:$4 sm:$0xff]  }
 0x2b0   :  { %5411 = vmatpush3.bf16.msra.mxu1 %v6463_v50  ;;  %5189 = vmatprep.subr.bf16.mxu0 %v6464_v36  ;;  %v6523_v50 = vld [vmem:[#allocation11 + $0x750] ss:$28 sps:$4 sm:$0xff]   ;;  %v6524_v36 = vld [vmem:[#allocation11 + $0x404] ss:$28 sps:$4 sm:$0xff]  }
 0x2b1   :  { %5413 = vmatprep.subr.bf16.mxu1 %v6467_v53  ;;  %v6527_v53 = vld [vmem:[#allocation11 + $0x948] ss:$28 sps:$4 sm:$0xff]  }
 0x2b3   :  { %5191 = vmatpush1.bf16.msra.mxu0 %v6466_v1  ;;  %v6526_v1 = vld [vmem:[#allocation11 + $0x400] ss:$28 sps:$4 sm:$0xff]  }
 0x2b4   :  { %5415 = vmatpush3.bf16.msra.mxu1 %v6468_v55  ;;  %5193 = vmatprep.subr.bf16.mxu0 %v6469_v57  ;;  %v6529_v55 = vld [vmem:[#allocation11 + $0x43c] ss:$28 sps:$4 sm:$0xff]  }
 0x2b5   :  { %5417 = vmatprep.subr.bf16.mxu1 %v6472_v58  ;;  %v6532_v57 = vld [vmem:[#allocation11 + $0x980] ss:$28 sps:$4 sm:$0xff]   ;;  %v6531_v58 = vld [vmem:[#allocation11 + $0x438] ss:$28 sps:$4 sm:$0xff]  }
 0x2b7   :  { %5195 = vmatpush1.bf16.msra.mxu0 %v6471_v49  ;;  %v6534_v49 = vld [vmem:[#allocation11 + $0x474] ss:$28 sps:$4 sm:$0xff]  }
 0x2b8   :  { %5419 = vmatpush3.bf16.msra.mxu1 %v6473_v54  ;;  %5197 = vmatprep.subr.bf16.mxu0 %v6474_v63  ;;  %v6537_v54 = vld [vmem:[#allocation11 + $0x9b8] ss:$28 sps:$4 sm:$0xff]   ;;  %v6536_v63 = vld [vmem:[#allocation11 + $0x470] ss:$28 sps:$4 sm:$0xff]  }
 0x2b9   :  { %5421 = vmatprep.subr.bf16.mxu1 %v6477_v48  ;;  %v6538_v48 = vld [vmem:[#allocation11 + $0x7f8] ss:$28 sps:$4 sm:$0xff]  }
 0x2bb   :  { %3026 = vmatmul.mubr.f32.vlgmr.msra.gmra.mrb[10].mxu1 %v7350_v7  ;;  %5199 = vmatpush1.bf16.msra.mxu0 %v6476_v24  ;;  %v6539_v24 = vld [vmem:[#allocation11 + $0x4ac] ss:$28 sps:$4 sm:$0xff]  }
 0x2bc   :  { %5423 = vmatpush3.bf16.msra.mxu1 %v6478_v39  ;;  %3095 = vmatprep.mubr.f32.mxu1 %v7356_v6  ;;  %v6542_v39 = vld [vmem:[#allocation11 + $0x9f0] ss:$28 sps:$4 sm:$0xff]  }
 0x2bd   :  { %5201 = vmatprep.subr.bf16.mxu0 %v6479_v40  ;;  %5425 = vmatprep.subr.bf16.mxu1 %v6482_v3  ;;  %v6541_v40 = vld [vmem:[#allocation11 + $0x4a8] ss:$28 sps:$4 sm:$0xff]   ;;  %v6543_v3 = vld [vmem:[#allocation11 + $0x830] ss:$28 sps:$4 sm:$0xff]  }
 0x2bf   :  { %5203 = vmatpush1.bf16.msra.mxu0 %v6481_v22  ;;  %v6544_v22 = vld [vmem:[#allocation11 + $0x4e4] ss:$28 sps:$4 sm:$0xff]  }
 0x2c0   :  { %5427 = vmatpush3.bf16.msra.mxu1 %v6483_v56  ;;  %5205 = vmatprep.subr.bf16.mxu0 %v6484_v4  ;;  %v6547_v56 = vld [vmem:[#allocation11 + $0xa28] ss:$28 sps:$4 sm:$0xff]   ;;  %v6546_v4 = vld [vmem:[#allocation11 + $0x4e0] ss:$28 sps:$4 sm:$0xff]  }
 0x2c1   :  { %5429 = vmatprep.subr.bf16.mxu1 %v6487_v5  ;;  %v6548_v5 = vld [vmem:[#allocation11 + $0x868] ss:$28 sps:$4 sm:$0xff]  }
 0x2c3   :  { %5207 = vmatpush1.bf16.msra.mxu0 %v6486_v8  ;;  %v6549_v8 = vld [vmem:[#allocation11 + $0x51c] ss:$28 sps:$4 sm:$0xff]  }
 0x2c4   :  { %5431 = vmatpush3.bf16.msra.mxu1 %v6488_v34  ;;  %5209 = vmatprep.subr.bf16.mxu0 %v6489_v10  ;;  %v6552_v34 = vld [vmem:[#allocation11 + $0xa60] ss:$28 sps:$4 sm:$0xff]   ;;  %v6551_v10 = vld [vmem:[#allocation11 + $0x518] ss:$28 sps:$4 sm:$0xff]  }
 0x2c5   :  { %5433 = vmatprep.subr.bf16.mxu1 %v6492_v12  ;;  %v6553_v12 = vld [vmem:[#allocation11 + $0x8a0] ss:$28 sps:$4 sm:$0xff]  }
 0x2c7   :  { %5211 = vmatpush1.bf16.msra.mxu0 %v6491_v9  ;;  %v6554_v9 = vld [vmem:[#allocation11 + $0x554] ss:$28 sps:$4 sm:$0xff]  }
 0x2c8   :  { %5435 = vmatpush3.bf16.msra.mxu1 %v6493_v13  ;;  %5213 = vmatprep.subr.bf16.mxu0 %v6494_v14  ;;  %v6556_v13 = vld [vmem:[#allocation11 + $0x550] ss:$28 sps:$4 sm:$0xff]   ;;  %v6557_v14 = vld [vmem:[#allocation11 + $0xa98] ss:$28 sps:$4 sm:$0xff]  }
 0x2c9   :  { %5437 = vmatprep.subr.bf16.mxu1 %v6497_v18  ;;  %v6558_v18 = vld [vmem:[#allocation11 + $0x58c] ss:$28 sps:$4 sm:$0xff]  }
 0x2cb   :  { %5215 = vmatpush1.bf16.msra.mxu0 %v6496_v21  ;;  %v6560_v21 = vld [vmem:[#allocation11 + $0x588] ss:$28 sps:$4 sm:$0xff]  }
 0x2cc   :  { %5439 = vmatpush3.bf16.msra.mxu1 %v6498_v27  ;;  %5217 = vmatprep.subr.bf16.mxu0 %v6499_v61  ;;  %v6561_v27 = vld [vmem:[#allocation11 + $0xad0] ss:$28 sps:$4 sm:$0xff]   ;;  %v6562_v61 = vld [vmem:[#allocation11 + $0x5c4] ss:$28 sps:$4 sm:$0xff]  }
 0x2cd   :  { %5441 = vmatprep.subr.bf16.mxu1 %v6502_v28  ;;  %v6564_v28 = vld [vmem:[#allocation11 + $0x5c0] ss:$28 sps:$4 sm:$0xff]  }
 0x2cf   :  { %5219 = vmatpush1.bf16.msra.mxu0 %v6501_v30  ;;  %v6565_v30 = vld [vmem:[#allocation11 + $0xb08] ss:$28 sps:$4 sm:$0xff]  }
 0x2d0   :  { %5443 = vmatpush3.bf16.msra.mxu1 %v6503_v62  ;;  %5221 = vmatprep.subr.bf16.mxu0 %v6504_v35  ;;  %v6566_v62 = vld [vmem:[#allocation11 + $0x5fc] ss:$28 sps:$4 sm:$0xff]  }
 0x2d1   :  { %5445 = vmatprep.subr.bf16.mxu1 %v6507_v2  ;;  %v6568_v35 = vld [vmem:[#allocation11 + $0x5f8] ss:$28 sps:$4 sm:$0xff]   ;;  %v6569_v2 = vld [vmem:[#allocation11 + $0xb40] ss:$28 sps:$4 sm:$0xff]  }
 0x2d3   :  { %5223 = vmatpush1.bf16.msra.mxu0 %v6506_v37  ;;  %v6570_v37 = vld [vmem:[#allocation11 + $0x634] ss:$28 sps:$4 sm:$0xff]  }
 0x2d4   :  { %5447 = vmatpush3.bf16.msra.mxu1 %v6508_v41  ;;  %5225 = vmatprep.subr.bf16.mxu0 %v6509_v43  ;;  %v6572_v41 = vld [vmem:[#allocation11 + $0x630] ss:$28 sps:$4 sm:$0xff]   ;;  %v6573_v43 = vld [vmem:[#allocation11 + $0xb78] ss:$28 sps:$4 sm:$0xff]  }
 0x2d5   :  { %5449 = vmatprep.subr.bf16.mxu1 %v6512_v44  ;;  %v6574_v44 = vld [vmem:[#allocation11 + $0x66c] ss:$28 sps:$4 sm:$0xff]  }
 0x2d7   :  { %5227 = vmatpush1.bf16.msra.mxu0 %v6511_v45  ;;  %v6576_v45 = vld [vmem:[#allocation11 + $0x668] ss:$28 sps:$4 sm:$0xff]  }
 0x2d8   :  { %5451 = vmatpush3.bf16.msra.mxu1 %v6513_v46  ;;  %5229 = vmatprep.subr.bf16.mxu0 %v6514_v47  ;;  %v6577_v46 = vld [vmem:[#allocation11 + $0xbb0] ss:$28 sps:$4 sm:$0xff]   ;;  %v6578_v47 = vld [vmem:[#allocation11 + $0x6a4] ss:$28 sps:$4 sm:$0xff]  }
 0x2d9   :  { %5453 = vmatprep.subr.bf16.mxu1 %v6517_v29  ;;  %v6580_v29 = vld [vmem:[#allocation11 + $0x6a0] ss:$28 sps:$4 sm:$0xff]  }
 0x2da   :  { %2742 = vmatmul.mubr.f32.vlgmr.msra.gmra.mrb[2].mxu0 %v7350_v7  ;;  %v6528_v7 = vld [vmem:[#allocation11 + $0x788] ss:$28 sps:$4 sm:$0xff]  }
 0x2db   :  { %3096 = vmatmul.mubr.f32.vlgmr.msra.gmra.mrb[12].mxu1 %v7361_v17  ;;  %5231 = vmatpush1.bf16.msra.mxu0 %v6516_v51  ;;  %v6581_v51 = vld [vmem:[#allocation11 + $0xbe8] ss:$28 sps:$4 sm:$0xff]  }
 0x2dc   :  { %2812 = vmatprep.mubr.f32.mxu0 %v7356_v6  ;;  %5455 = vmatpush3.bf16.msra.mxu1 %v6518_v32  ;;  %v6533_v6 = vld [vmem:[#allocation11 + $0x7c0] ss:$28 sps:$4 sm:$0xff]  }
 0x2dd   :  { %3165 = vmatprep.mubr.f32.mxu1 %v7364_v19  ;;  %5233 = vmatprep.subr.bf16.mxu0 %v6519_v20  ;;  %v6582_v32 = vld [vmem:[#allocation11 + $0x6dc] ss:$28 sps:$4 sm:$0xff]  }
 0x2de   :  { %5457 = vmatprep.subr.bf16.mxu1 %v6522_v59  ;;  %v6584_v20 = vld [vmem:[#allocation11 + $0x6d8] ss:$28 sps:$4 sm:$0xff]   ;;  %v6585_v59 = vld [vmem:[#allocation11 + $0xc20] ss:$28 sps:$4 sm:$0xff]  }
 0x2df   :  { %5235 = vmatpush1.bf16.msra.mxu0 %v6521_v11  ;;  %v6586_v11 = vld [vmem:[#allocation11 + $0x714] ss:$28 sps:$4 sm:$0xff]  }
 0x2e0   :  { %5459 = vmatpush3.bf16.msra.mxu1 %v6523_v50  ;;  %5237 = vmatprep.subr.bf16.mxu0 %v6524_v36  ;;  %v6588_v50 = vld [vmem:[#allocation11 + $0x710] ss:$28 sps:$4 sm:$0xff]  }
 0x2e1   :  { %5461 = vmatprep.subr.bf16.mxu1 %v6527_v53  ;;  %v6589_v36 = vld [vmem:[#allocation11 + $0x74c] ss:$28 sps:$4 sm:$0xff]  }
 0x2e2   :  { %v6591_v53 = vld [vmem:[#allocation11 + $0x748] ss:$28 sps:$4 sm:$0xff]  }
 0x2e3   :  { %5239 = vmatpush1.bf16.msra.mxu0 %v6526_v1  ;;  %v6592_v1 = vld [vmem:[#allocation11 + $0x784] ss:$28 sps:$4 sm:$0xff]  }
 0x2e4   :  { %5463 = vmatpush3.bf16.msra.mxu1 %v6528_v7  ;;  %5241 = vmatprep.subr.bf16.mxu0 %v6529_v55  ;;  %v6594_v7 = vld [vmem:[#allocation11 + $0x780] ss:$28 sps:$4 sm:$0xff]  }
 0x2e5   :  { %5465 = vmatprep.subr.bf16.mxu1 %v6532_v57  ;;  %v6595_v55 = vld [vmem:[#allocation11 + $0x7bc] ss:$28 sps:$4 sm:$0xff]  }
 0x2e6   :  { %v6597_v57 = vld [vmem:[#allocation11 + $0x7b8] ss:$28 sps:$4 sm:$0xff]  }
 0x2e7   :  { %5243 = vmatpush1.bf16.msra.mxu0 %v6531_v58  ;;  %v6598_v58 = vld [vmem:[#allocation11 + $0x7f4] ss:$28 sps:$4 sm:$0xff]  }
 0x2e8   :  { %5467 = vmatpush3.bf16.msra.mxu1 %v6533_v6  ;;  %5245 = vmatprep.subr.bf16.mxu0 %v6534_v49  ;;  %v6600_v6 = vld [vmem:[#allocation11 + $0x7f0] ss:$28 sps:$4 sm:$0xff]   ;;  %v6603_v49 = vld [vmem:[#allocation11 + $0x828] ss:$28 sps:$4 sm:$0xff]  }
 0x2e9   :  { %5469 = vmatprep.subr.bf16.mxu1 %v6537_v54  ;;  %v6604_v54 = vld [vmem:[#allocation11 + $0x864] ss:$28 sps:$4 sm:$0xff]  }
 0x2eb   :  { %5247 = vmatpush1.bf16.msra.mxu0 %v6536_v63  ;;  %v6607_v63 = vld [vmem:[#allocation11 + $0x89c] ss:$28 sps:$4 sm:$0xff]  }
 0x2ec   :  { %5471 = vmatpush3.bf16.msra.mxu1 %v6538_v48  ;;  %5249 = vmatprep.subr.bf16.mxu0 %v6539_v24  ;;  %v6609_v48 = vld [vmem:[#allocation11 + $0x898] ss:$28 sps:$4 sm:$0xff]  }
 0x2ed   :  { %5473 = vmatprep.subr.bf16.mxu1 %v6542_v39  ;;  %v6610_v24 = vld [vmem:[#allocation11 + $0x8d4] ss:$28 sps:$4 sm:$0xff]  }
 0x2ee   :  { %v6612_v39 = vld [vmem:[#allocation11 + $0x8d0] ss:$28 sps:$4 sm:$0xff]  }
 0x2ef   :  { %5251 = vmatpush1.bf16.msra.mxu0 %v6541_v40  ;;  %v6613_v40 = vld [vmem:[#allocation11 + $0x90c] ss:$28 sps:$4 sm:$0xff]  }
 0x2f0   :  { %5475 = vmatpush3.bf16.msra.mxu1 %v6543_v3  ;;  %5253 = vmatprep.subr.bf16.mxu0 %v6544_v22  ;;  %v6615_v3 = vld [vmem:[#allocation11 + $0x908] ss:$28 sps:$4 sm:$0xff]  }
 0x2f1   :  { %5477 = vmatprep.subr.bf16.mxu1 %v6547_v56  ;;  %v6616_v22 = vld [vmem:[#allocation11 + $0x944] ss:$28 sps:$4 sm:$0xff]  }
 0x2f2   :  { %v6618_v56 = vld [vmem:[#allocation11 + $0x940] ss:$28 sps:$4 sm:$0xff]  }
 0x2f3   :  { %5255 = vmatpush1.bf16.msra.mxu0 %v6546_v4  ;;  %v6619_v4 = vld [vmem:[#allocation11 + $0x97c] ss:$28 sps:$4 sm:$0xff]  }
 0x2f4   :  { %5479 = vmatpush3.bf16.msra.mxu1 %v6548_v5  ;;  %5257 = vmatprep.subr.bf16.mxu0 %v6549_v8  ;;  %v6621_v5 = vld [vmem:[#allocation11 + $0x978] ss:$28 sps:$4 sm:$0xff]  }
 0x2f5   :  { %5481 = vmatprep.subr.bf16.mxu1 %v6552_v34  ;;  %v6622_v8 = vld [vmem:[#allocation11 + $0x9b4] ss:$28 sps:$4 sm:$0xff]  }
 0x2f6   :  { %v6624_v34 = vld [vmem:[#allocation11 + $0x9b0] ss:$28 sps:$4 sm:$0xff]  }
 0x2f7   :  { %5259 = vmatpush1.bf16.msra.mxu0 %v6551_v10  ;;  %v6625_v10 = vld [vmem:[#allocation11 + $0x9ec] ss:$28 sps:$4 sm:$0xff]  }
 0x2f8   :  { %5483 = vmatpush3.bf16.msra.mxu1 %v6553_v12  ;;  %5261 = vmatprep.subr.bf16.mxu0 %v6554_v9  ;;  %v6627_v12 = vld [vmem:[#allocation11 + $0x9e8] ss:$28 sps:$4 sm:$0xff]  }
 0x2f9   :  { %5484 = vmatprep.subr.bf16.mxu1 %v6980_v15  ;;  %v6628_v9 = vld [vmem:[#allocation11 + $0xa24] ss:$28 sps:$4 sm:$0xff]  }
 0x2fb   :  { %3166 = vmatmul.mubr.f32.vlgmr.msra.gmra.mrb[14].mxu1 %v7371_v16  ;;  %5263 = vmatpush1.bf16.msra.mxu0 %v6556_v13  ;;  %v6630_v13 = vld [vmem:[#allocation11 + $0xa20] ss:$28 sps:$4 sm:$0xff]  }
 0x2fc   :  { %5486 = vmatpush3.bf16.msra.mxu1 %v6557_v14  ;;  %5265 = vmatprep.subr.bf16.mxu0 %v6558_v18  ;;  %v6631_v14 = vld [vmem:[#allocation11 + $0xa5c] ss:$28 sps:$4 sm:$0xff]  }
 0x2fd   :  { %5487 = vmatprep.subr.bf16.mxu1 %v6980_v15  ;;  %4648 = vmatprep.mubr.msk.f32.mxu1 %vm6981_vm1, %v6979_v0  ;;  %v6633_v18 = vld [vmem:[#allocation11 + $0xa58] ss:$28 sps:$4 sm:$0xff]  }
 0x2ff   :  { %5267 = vmatpush1.bf16.msra.mxu0 %v6560_v21  ;;  %v6634_v21 = vld [vmem:[#allocation11 + $0xa94] ss:$28 sps:$4 sm:$0xff]  }
 0x300   :  { %5489 = vmatpush3.bf16.msra.mxu1 %v6561_v27  ;;  %5269 = vmatprep.subr.bf16.mxu0 %v6562_v61  ;;  %v6636_v27 = vld [vmem:[#allocation11 + $0xa90] ss:$28 sps:$4 sm:$0xff]  }
 0x301   :  { %5490 = vmatprep.subr.bf16.mxu1 %v6980_v15  ;;  %v6637_v61 = vld [vmem:[#allocation11 + $0xacc] ss:$28 sps:$4 sm:$0xff]  }
 0x303   :  { %5271 = vmatpush1.bf16.msra.mxu0 %v6564_v28  ;;  %v6639_v28 = vld [vmem:[#allocation11 + $0xac8] ss:$28 sps:$4 sm:$0xff]  }
 0x304   :  { %5492 = vmatpush3.bf16.msra.mxu1 %v6565_v30  ;;  %5273 = vmatprep.subr.bf16.mxu0 %v6566_v62  ;;  %v6640_v30 = vld [vmem:[#allocation11 + $0xb04] ss:$28 sps:$4 sm:$0xff]  }
 0x305   :  { %5493 = vmatprep.subr.bf16.mxu1 %v6980_v15  ;;  %v6642_v62 = vld [vmem:[#allocation11 + $0xb00] ss:$28 sps:$4 sm:$0xff]  }
 0x307   :  { %5275 = vmatpush1.bf16.msra.mxu0 %v6568_v35  ;;  %v6643_v35 = vld [vmem:[#allocation11 + $0xb3c] ss:$28 sps:$4 sm:$0xff]  }
 0x308   :  { %5495 = vmatpush3.bf16.msra.mxu1 %v6569_v2  ;;  %5277 = vmatprep.subr.bf16.mxu0 %v6570_v37  ;;  %v6645_v2 = vld [vmem:[#allocation11 + $0xb38] ss:$28 sps:$4 sm:$0xff]  }
 0x309   :  { %5496 = vmatprep.subr.bf16.mxu1 %v6980_v15  ;;  %v6646_v37 = vld [vmem:[#allocation11 + $0xb74] ss:$28 sps:$4 sm:$0xff]  }
 0x30b   :  { %5279 = vmatpush1.bf16.msra.mxu0 %v6572_v41  ;;  %v6648_v41 = vld [vmem:[#allocation11 + $0xb70] ss:$28 sps:$4 sm:$0xff]  }
 0x30c   :  { %5498 = vmatpush3.bf16.msra.mxu1 %v6573_v43  ;;  %5281 = vmatprep.subr.bf16.mxu0 %v6574_v44  ;;  %v7406_v43 = vld [vmem:[#allocation13] sm:$0xff] }
 0x30d   :  { %5499 = vmatprep.subr.bf16.mxu1 %v6980_v15  ;;  %v2077_v44 = vrot.slane %v7406_v43, %v7196_v23 }
 0x30f   :  { %5283 = vmatpush1.bf16.msra.mxu0 %v6576_v45  ;;  %v2085_v45 = vrot.slane %v7406_v43, %v7210_v31 }
 0x310   :  { %5501 = vmatpush3.bf16.msra.mxu1 %v6577_v46  ;;  %5285 = vmatprep.subr.bf16.mxu0 %v6578_v47  ;;  %v2081_v46 = vrot.slane %v7406_v43, %v7201_v25  ;;  %v6651_v47 = vld [vmem:[#allocation11 + $0xba8] ss:$28 sps:$4 sm:$0xff]  }
 0x311   :  { %5502 = vmatprep.subr.bf16.mxu1 %v6980_v15 }
 0x313   :  { %5287 = vmatpush1.bf16.msra.mxu0 %v6580_v29  ;;  %v2089_v29 = vrot.slane %v7406_v43, %v7215_v33 }
 0x314   :  { %5504 = vmatpush3.bf16.msra.mxu1 %v6581_v51  ;;  %5289 = vmatprep.subr.bf16.mxu0 %v6582_v32  ;;  %v6652_v51 = vld [vmem:[#allocation11 + $0xbe4] ss:$28 sps:$4 sm:$0xff]  }
 0x315   :  { %5505 = vmatprep.subr.bf16.mxu1 %v6980_v15 }
 0x317   :  { %5291 = vmatpush1.bf16.msra.mxu0 %v6584_v20 }
 0x318   :  { %5507 = vmatpush3.bf16.msra.mxu1 %v6585_v59  ;;  %5293 = vmatprep.subr.bf16.mxu0 %v6586_v11 }
 0x31a   :  { %2813 = vmatmul.mubr.f32.vlgmr.msra.gmra.mrb[2].mxu0 %v7361_v17  ;;  %v6601_v17 = vld [vmem:[#allocation11 + $0x82c] ss:$28 sps:$4 sm:$0xff]  }
 0x31b   :  { %4649 = vmatmul.mubr.f32.vlgmr.msra.gmra.mrb[16].mxu1 %v7378_v26  ;;  %5295 = vmatpush1.bf16.msra.mxu0 %v6588_v50 }
 0x31c   :  { %2883 = vmatprep.mubr.f32.mxu0 %v7364_v19  ;;  %5297 = vmatprep.subr.bf16.mxu0 %v6589_v36  ;;  %v6606_v19 = vld [vmem:[#allocation11 + $0x860] ss:$28 sps:$4 sm:$0xff]  }
 0x31f   :  { %5299 = vmatpush1.bf16.msra.mxu0 %v6591_v53 }
 0x320   :  { %5301 = vmatprep.subr.bf16.mxu0 %v6592_v1  ;;  %v6654_v1 = vld [vmem:[#allocation11 + $0xbe0] ss:$28 sps:$4 sm:$0xff]  }
 0x323   :  { %5303 = vmatpush1.bf16.msra.mxu0 %v6594_v7 }
 0x324   :  { %5305 = vmatprep.subr.bf16.mxu0 %v6595_v55 }
 0x327   :  { %5307 = vmatpush1.bf16.msra.mxu0 %v6597_v57 }
 0x328   :  { %5309 = vmatprep.subr.bf16.mxu0 %v6598_v58  ;;  %v6655_v58 = vld [vmem:[#allocation11 + $0xc1c] ss:$28 sps:$4 sm:$0xff]  }
 0x32b   :  { %5311 = vmatpush1.bf16.msra.mxu0 %v6600_v6 }
 0x32c   :  { %5313 = vmatprep.subr.bf16.mxu0 %v6601_v17 }
 0x32f   :  { %5315 = vmatpush1.bf16.msra.mxu0 %v6603_v49 }
 0x330   :  { %5317 = vmatprep.subr.bf16.mxu0 %v6604_v54 }
 0x333   :  { %5319 = vmatpush1.bf16.msra.mxu0 %v6606_v19 }
 0x334   :  { %5321 = vmatprep.subr.bf16.mxu0 %v6607_v63 }
 0x337   :  { %5323 = vmatpush1.bf16.msra.mxu0 %v6609_v48 }
 0x338   :  { %5325 = vmatprep.subr.bf16.mxu0 %v6610_v24 }
 0x33b   :  { %5327 = vmatpush1.bf16.msra.mxu0 %v6612_v39 }
 0x33c   :  { %5329 = vmatprep.subr.bf16.mxu0 %v6613_v40 }
 0x33f   :  { %5331 = vmatpush1.bf16.msra.mxu0 %v6615_v3 }
 0x340   :  { %5333 = vmatprep.subr.bf16.mxu0 %v6616_v22 }
 0x343   :  { %5335 = vmatpush1.bf16.msra.mxu0 %v6618_v56  ;;  %v6657_v56 = vld [vmem:[#allocation11 + $0xc18] ss:$28 sps:$4 sm:$0xff]  }
 0x344   :  { %5337 = vmatprep.subr.bf16.mxu0 %v6619_v4 }
 0x347   :  { %5339 = vmatpush1.bf16.msra.mxu0 %v6621_v5 }
 0x348   :  { %5341 = vmatprep.subr.bf16.mxu0 %v6622_v8 }
 0x34b   :  { %5343 = vmatpush1.bf16.msra.mxu0 %v6624_v34 }
 0x34c   :  { %5345 = vmatprep.subr.bf16.mxu0 %v6625_v10 }
 0x34f   :  { %5347 = vmatpush1.bf16.msra.mxu0 %v6627_v12 }
 0x350   :  { %5349 = vmatprep.subr.bf16.mxu0 %v6628_v9 }
 0x353   :  { %5351 = vmatpush1.bf16.msra.mxu0 %v6630_v13 }
 0x354   :  { %5353 = vmatprep.subr.bf16.mxu0 %v6631_v14 }
 0x357   :  { %5355 = vmatpush1.bf16.msra.mxu0 %v6633_v18 }
 0x358   :  { %5357 = vmatprep.subr.bf16.mxu0 %v6634_v21 }
 0x35a   :  { %2884 = vmatmul.mubr.f32.vlgmr.msra.gmra.mrb[2].mxu0 %v7371_v16  ;;  %v6649_v16 = vld [vmem:[#allocation11 + $0xbac] ss:$28 sps:$4 sm:$0xff]  }
 0x35b   :  { %5359 = vmatpush1.bf16.msra.mxu0 %v6636_v27  ;;  %2954 = vmatprep.mubr.f32.mxu0 %v6979_v0 }
 0x35c   :  { %5361 = vmatprep.subr.bf16.mxu0 %v6637_v61 }
 0x35f   :  { %5363 = vmatpush1.bf16.msra.mxu0 %v6639_v28 }
 0x360   :  { %5365 = vmatprep.subr.bf16.mxu0 %v6640_v30 }
 0x363   :  { %5367 = vmatpush1.bf16.msra.mxu0 %v6642_v62 }
 0x364   :  { %5369 = vmatprep.subr.bf16.mxu0 %v6643_v35 }
 0x367   :  { %5371 = vmatpush1.bf16.msra.mxu0 %v6645_v2 }
 0x368   :  { %5373 = vmatprep.subr.bf16.mxu0 %v6646_v37 }
 0x36b   :  { %5375 = vmatpush1.bf16.msra.mxu0 %v6648_v41 }
 0x36c   :  { %5377 = vmatprep.subr.bf16.mxu0 %v6649_v16 }
 0x36d   :  { %v2388_v32 = vpop.f32.mrb[0].mxu0 }
 0x36e   :  { %v7416_v20 = vadd.f32 %v2388_v32, %v2077_v44  ;;  %v2672_v59 = vpop.f32.mrb[8].mxu1  ;;  %v2390_v11 = vpop.f32.mrb[1].mxu0 }
 0x36f   :  { %v7418_v50 = vadd.f32 %v2672_v59, %v2085_v45  ;;  %v7420_v36 = vadd.f32 %v2390_v11, %v2081_v46  ;;  %v2674_v53 = vpop.f32.mrb[9].mxu1  ;;  %5379 = vmatpush1.bf16.msra.mxu0 %v6651_v47 }
 0x370   :  { %v3241_v7 = vrot.slane %v7416_v20, 4  ;;  %v3283_v55 = vmul.f32 %v7416_v20, %v7416_v20  ;;  %v7425_v57 = vadd.f32 %v2674_v53, %v2089_v29  ;;  %5381 = vmatprep.subr.bf16.mxu0 %v6652_v51 }
 0x371   :  { %v3253_v6 = vrot.slane %v7418_v50, 4  ;;  %v3285_v17 = vmul.f32 %v7418_v50, %v7418_v50  ;;  %v3247_v49 = vrot.slane %v7420_v36, 4  ;;  %v3284_v54 = vmul.f32 %v7420_v36, %v7420_v36 }
 0x372   :  { %v3242_v19 = vadd.f32 %v7416_v20, %v3241_v7  ;;  %v3290_v63 = vrot.slane %v3283_v55, 4  ;;  %v3259_v48 = vrot.slane %v7425_v57, 4  ;;  %v3286_v24 = vmul.f32 %v7425_v57, %v7425_v57 }
 0x373   :  { %v3254_v39 = vadd.f32 %v7418_v50, %v3253_v6  ;;  %v3302_v40 = vrot.slane %v3285_v17, 4  ;;  %v3248_v3 = vadd.f32 %v7420_v36, %v3247_v49  ;;  %v3296_v22 = vrot.slane %v3284_v54, 4  ;;  %5383 = vmatpush1.bf16.msra.mxu0 %v6654_v1 }
 0x374   :  { %v3243_v4 = vrot.slane %v3242_v19, 2  ;;  %v3291_v5 = vadd.f32 %v3290_v63, %v3283_v55  ;;  %v3260_v8 = vadd.f32 %v7425_v57, %v3259_v48  ;;  %v3308_v34 = vrot.slane %v3286_v24, 4  ;;  %5385 = vmatprep.subr.bf16.mxu0 %v6655_v58 }
 0x375   :  { %v3255_v10 = vrot.slane %v3254_v39, 2  ;;  %v3303_v12 = vadd.f32 %v3302_v40, %v3285_v17  ;;  %v3249_v9 = vrot.slane %v3248_v3, 2  ;;  %v3297_v13 = vadd.f32 %v3296_v22, %v3284_v54 }
 0x376   :  { %v3244_v14 = vadd.f32 %v3243_v4, %v3242_v19  ;;  %v3292_v18 = vrot.slane %v3291_v5, 2  ;;  %v3261_v21 = vrot.slane %v3260_v8, 2  ;;  %v3309_v27 = vadd.f32 %v3308_v34, %v3286_v24 }
 0x377   :  { %v3256_v61 = vadd.f32 %v3255_v10, %v3254_v39  ;;  %v3304_v28 = vrot.slane %v3303_v12, 2  ;;  %v3250_v30 = vadd.f32 %v3249_v9, %v3248_v3  ;;  %v3298_v62 = vrot.slane %v3297_v13, 2  ;;  %5387 = vmatpush1.bf16.msra.mxu0 %v6657_v56 }
 0x378   :  { %v3245_v35 = vrot.slane %v3244_v14, 1  ;;  %v3293_v2 = vadd.f32 %v3292_v18, %v3291_v5  ;;  %v3262_v37 = vadd.f32 %v3261_v21, %v3260_v8  ;;  %v3310_v41 = vrot.slane %v3309_v27, 2  ;;  %5604 = vmatprep.subr.bf16.mxu0 %v6980_v15 }
 0x379   :  { %v3257_v16 = vrot.slane %v3256_v61, 1  ;;  %v3305_v44 = vadd.f32 %v3304_v28, %v3303_v12  ;;  %v3251_v45 = vrot.slane %v3250_v30, 1  ;;  %v3299_v46 = vadd.f32 %v3298_v62, %v3297_v13 }
 0x37a   :  { %v3246_v47 = vadd.f32 %v3245_v35, %v3244_v14  ;;  %v3294_v29 = vrot.slane %v3293_v2, 1  ;;  %v3263_v51 = vrot.slane %v3262_v37, 1  ;;  %v3311_v32 = vadd.f32 %v3310_v41, %v3309_v27  ;;  %2955 = vmatmul.mubr.f32.vlgmr.msra.gmra.mrb[2].mxu0 %v7378_v26 }
 0x37b   :  { %v3258_v59 = vadd.f32 %v3257_v16, %v3256_v61  ;;  %v3306_v11 = vrot.slane %v3305_v44, 1  ;;  %v3300_v53 = vrot.slane %v3299_v46, 1  ;;  %4683 = vmatprep.mubr.msk.f32.mxu0 %vm6981_vm1, %v6979_v0  ;;  %v3252_v1 = vadd.f32 %v3251_v45, %v3250_v30 }
 0x37c   :  { %v3295_v7 = vadd.f32 %v3294_v29, %v3293_v2  ;;  %v7444_v55 = vmul.f32 0.125, %v3246_v47  ;;  %v3264_v58 = vadd.f32 %v3263_v51, %v3262_v37  ;;  %v3312_v6 = vrot.slane %v3311_v32, 1 }
 0x37d   :  { %v3307_v17 = vadd.f32 %v3306_v11, %v3305_v44  ;;  %v7446_v49 = vmul.f32 0.125, %v3258_v59  ;;  %v3301_v54 = vadd.f32 %v3300_v53, %v3299_v46  ;;  %v7448_v19 = vmul.f32 0.125, %v3252_v1 }
 0x37e   :  { %v3339_v63 = vmul.f32 0.125, %v3295_v7  ;;  %v3346_v26 = vmul.f32 %v7444_v55, %v7444_v55  ;;  %v3313_v48 = vadd.f32 %v3312_v6, %v3311_v32  ;;  %v7456_v22 = vmul.f32 0.125, %v3264_v58 }
 0x37f   :  { %v3341_v24 = vmul.f32 0.125, %v3307_v17  ;;  %v3348_v0 = vmul.f32 %v7446_v49, %v7446_v49  ;;  %v3441_v39 = vsub.f32 %v7418_v50, %v7446_v49  ;;  %v3340_v40 = vmul.f32 0.125, %v3301_v54  ;;  %v4308_v17 = vld [vmem:[#allocation17 + $0x40] sm:$0xff]   ;;  %v4317_v50 = vld [vmem:[#allocation17 + $0x88] sm:$0xff]   ;;  %v4326_v49 = vld [vmem:[#allocation17 + $0xd0] sm:$0xff]  }
 0x380   :  { %v3353_v3 = vsub.f32 %v3339_v63, %v3346_v26  ;;  %v3342_v56 = vmul.f32 0.125, %v3313_v48  ;;  %v3347_v4 = vmul.f32 %v7448_v19, %v7448_v19  ;;  %v3349_v34 = vmul.f32 %v7456_v22, %v7456_v22  ;;  %5509 = vmatprep.subr.bf16.mxu1 %v4308_v17  ;;  %v4078_v54 = vld [vmem:[#allocation17] sm:$0xff]   ;;  %v4309_v26 = vld [vmem:[#allocation17 + $0x48] sm:$0xff]  }
 0x381   :  { %v3355_v5 = vsub.f32 %v3341_v24, %v3348_v0  ;;  %v2101_v29 = vrot.slane %v7406_v43, %v7244_v60  ;;  %v4348_v63 = vld [vmem:[#allocation17 + $0x180] sm:$0xff]   ;;  %5511 = vmatpush3.bf16.msra.mxu1 %v4078_v54  ;;  %v4301_v48 = vld [vmem:[#allocation17 + $0x8] sm:$0xff]  }
 0x382   :  { %v3360_v8 = vmax.f32 %v3353_v3, 0.0  ;;  %v3354_v10 = vsub.f32 %v3340_v40, %v3347_v4  ;;  %v3356_v13 = vsub.f32 %v3342_v56, %v3349_v34  ;;  %5606 = vmatpush3.bf16.msra.mxu0 %v4348_v63  ;;  %5513 = vmatprep.subr.bf16.mxu1 %v4309_v26  ;;  %v4349_v24 = vld [vmem:[#allocation17 + $0x188] sm:$0xff]   ;;  %v4310_v56 = vld [vmem:[#allocation17 + $0x50] sm:$0xff]   ;;  %v4303_v34 = vld [vmem:[#allocation17 + $0x18] sm:$0xff]  }
 0x383   :  { %v3362_v12 = vmax.f32 %v3355_v5, 0.0  ;;  %5607 = vmatprep.subr.bf16.mxu0 %v6980_v15  ;;  %v4302_v4 = vld [vmem:[#allocation17 + $0x10] sm:$0xff]  }
 0x384   :  { %v3368_v9 = vadd.f32 1e-05, %v3360_v8  ;;  %v3361_v14 = vmax.f32 %v3354_v10, 0.0  ;;  %v3363_v21 = vmax.f32 %v3356_v13, 0.0  ;;  %v4350_v5 = vld [vmem:[#allocation17 + $0x190] sm:$0xff]   ;;  %v4311_v8 = vld [vmem:[#allocation17 + $0x58] sm:$0xff]  }
 0x385   :  { %v3370_v18 = vadd.f32 1e-05, %v3362_v12  ;;  %5515 = vmatpush3.bf16.msra.mxu1 %v4301_v48  ;;  %v4351_v10 = vld [vmem:[#allocation17 + $0x198] sm:$0xff]   ;;  %v4312_v12 = vld [vmem:[#allocation17 + $0x60] sm:$0xff]  }
 0x386   :  { %6672 = vrsqrt.f32 %v3368_v9  ;;  %v3369_v27 = vadd.f32 1e-05, %v3361_v14  ;;  %v3371_v61 = vadd.f32 1e-05, %v3363_v21  ;;  %5609 = vmatpush3.bf16.msra.mxu0 %v4349_v24  ;;  %5517 = vmatprep.subr.bf16.mxu1 %v4310_v56  ;;  %v4304_v9 = vld [vmem:[#allocation17 + $0x20] sm:$0xff]   ;;  %v4313_v14 = vld [vmem:[#allocation17 + $0x68] sm:$0xff]  }
 0x387   :  { %6674 = vrsqrt.f32 %v3370_v18  ;;  %5610 = vmatprep.subr.bf16.mxu0 %v6980_v15  ;;  %v4352_v13 = vld [vmem:[#allocation17 + $0x1a0] sm:$0xff]   ;;  %v4305_v18 = vld [vmem:[#allocation17 + $0x28] sm:$0xff]  }
 0x388   :  { %6676 = vrsqrt.f32 %v3369_v27  ;;  %v4353_v21 = vld [vmem:[#allocation17 + $0x1a8] sm:$0xff]   ;;  %v4314_v27 = vld [vmem:[#allocation17 + $0x70] sm:$0xff]  }
 0x389   :  { %6678 = vrsqrt.f32 %v3371_v61  ;;  %5519 = vmatpush3.bf16.msra.mxu1 %v4302_v4  ;;  %v4306_v61 = vld [vmem:[#allocation17 + $0x30] sm:$0xff]  }
 0x38a   :  { %5612 = vmatpush3.bf16.msra.mxu0 %v4350_v5  ;;  %5521 = vmatprep.subr.bf16.mxu1 %v4311_v8 }
 0x38b   :  { %5613 = vmatprep.subr.bf16.mxu0 %v6980_v15 }
 0x38d   :  { %5523 = vmatpush3.bf16.msra.mxu1 %v4303_v34 }
 0x38e   :  { %v4393_v28 = vpop.f32.mrb[10].mxu1  ;;  %5615 = vmatpush3.bf16.msra.mxu0 %v4351_v10  ;;  %5525 = vmatprep.subr.bf16.mxu1 %v4312_v12 }
 0x38f   :  { %v4394_v30 = vpop.f32.mrb[11].mxu1  ;;  %5616 = vmatprep.subr.bf16.mxu0 %v6980_v15 }
 0x390   :  { %v6673_v62 = vpop.eup %6672  ;;  %v4395_v35 = vadd.f32 %v4394_v30, %v4393_v28  ;;  %v4354_v28 = vld [vmem:[#allocation17 + $0x1b0] sm:$0xff]   ;;  %v4315_v30 = vld [vmem:[#allocation17 + $0x78] sm:$0xff]  }
 0x391   :  { %v6675_v2 = vpop.eup %6674  ;;  %5527 = vmatpush3.bf16.msra.mxu1 %v4304_v9 }
 0x392   :  { %v6677_v37 = vpop.eup %6676  ;;  %v3028_v59 = vadd.f32 %v4395_v35, %v2101_v29  ;;  %5618 = vmatpush3.bf16.msra.mxu0 %v4352_v13  ;;  %5529 = vmatprep.subr.bf16.mxu1 %v4313_v14  ;;  %v4355_v35 = vld [vmem:[#allocation17 + $0x1b8] sm:$0xff]  }
 0x393   :  { %v3389_v41 = vcombine.low %v6673_v62, %v6677_v37  ;;  %v6679_v16 = vpop.eup %6678  ;;  %5619 = vmatprep.subr.bf16.mxu0 %v6980_v15  ;;  %v4307_v62 = vld [vmem:[#allocation17 + $0x38] sm:$0xff]  }
 0x394   :  { %v3390_v44 = vcombine.low %v6675_v2, %v6679_v16  ;;  %v4324_v2 = vld [vmem:[#allocation17 + $0xc0] sm:$0xff]  }
 0x395   :  { %v7463_v45 = vrot.slane %v3389_v41, %v7305_v52  ;;  %5531 = vmatpush3.bf16.msra.mxu1 %v4305_v18 }
 0x396   :  { %v7466_v46 = vrot.slane %v3390_v44, %v7305_v52  ;;  %5621 = vmatpush3.bf16.msra.mxu0 %v4353_v21  ;;  %5533 = vmatprep.subr.bf16.mxu1 %v4314_v27 }
 0x397   :  { %5622 = vmatprep.subr.bf16.mxu0 %v6980_v15 }
 0x398   :  { %v3420_v47 = vcombine.low %v7463_v45, %v7466_v46 }
 0x399   :  { %5535 = vmatpush3.bf16.msra.mxu1 %v4306_v61 }
 0x39a   :  { %5624 = vmatpush3.bf16.msra.mxu0 %v4354_v28  ;;  %5537 = vmatprep.subr.bf16.mxu1 %v4315_v30 }
 0x39b   :  { %5625 = vmatprep.subr.bf16.mxu0 %v6980_v15 }
 0x39d   :  { %5539 = vmatpush3.bf16.msra.mxu1 %v4307_v62 }
 0x39e   :  { %5627 = vmatpush3.bf16.msra.mxu0 %v4355_v35  ;;  %5541 = vmatprep.subr.bf16.mxu1 %v4324_v2 }
 0x3ae   :  { %v4428_v51 = vpop.f32.mrb[12].mxu1 }
 0x3af   :  { %v4429_v32 = vpop.f32.mrb[13].mxu1 }
 0x3b0   :  { %v4430_v11 = vadd.f32 %v4429_v32, %v4428_v51 }
 0x3b2   :  { %v3098_v53 = vadd.f32 %v4430_v11, %v3028_v59 }
 0x3ce   :  { %v4463_v1 = vpop.f32.mrb[14].mxu1 }
 0x3cf   :  { %v4464_v7 = vpop.f32.mrb[15].mxu1 }
 0x3d0   :  { %v4465_v58 = vadd.f32 %v4464_v7, %v4463_v1  ;;  %v2097_v1 = vrot.slane %v7406_v43, %v7230_v42 }
 0x3d2   :  { %v3168_v6 = vadd.f32 %v4465_v58, %v3098_v53  ;;  %v2093_v53 = vrot.slane %v7406_v43, %v7224_v38 }
 0x3ee   :  { %v3237_v0 = vpop.f32.mrb[16].mxu1 }
 0x3ef   :  { %v7473_v40 = vadd.f32 %v3237_v0, %v3168_v6  ;;  %v4650_v3 = vpop.f32.mrb[17].mxu1 }
 0x3f1   :  { %v3277_v37 = vrot.slane %v7473_v40, 4  ;;  %v3289_v41 = vmul.f32 %v7473_v40, %v7473_v40 }
 0x3f3   :  { %v3278_v16 = vadd.f32 %v3277_v37, %v7473_v40  ;;  %v3326_v44 = vrot.slane %v3289_v41, 4 }
 0x3f5   :  { %v3279_v29 = vrot.slane %v3278_v16, 2  ;;  %v3327_v51 = vadd.f32 %v3326_v44, %v3289_v41 }
 0x3f7   :  { %v3280_v32 = vadd.f32 %v3279_v29, %v3278_v16  ;;  %v3328_v59 = vrot.slane %v3327_v51, 2 }
 0x3f9   :  { %v3281_v11 = vrot.slane %v3280_v32, 1  ;;  %v3329_v15 = vadd.f32 %v3328_v59, %v3327_v51 }
 0x3fb   :  { %v3282_v7 = vadd.f32 %v3281_v11, %v3280_v32  ;;  %v3330_v58 = vrot.slane %v3329_v15, 1 }
 0x3fd   :  { %v3331_v24 = vadd.f32 %v3330_v58, %v3329_v15  ;;  %v7496_v0 = vmul.f32 0.125, %v3282_v7 }
 0x3ff   :  { %v3345_v12 = vmul.f32 0.125, %v3331_v24  ;;  %v3352_v9 = vmul.f32 %v7496_v0, %v7496_v0 }
 0x401   :  { %v3359_v62 = vsub.f32 %v3345_v12, %v3352_v9  ;;  %v3428_v9 = vrot.slane %v3420_v47, %v7305_v52 }
 0x403   :  { %v3366_v32 = vmax.f32 %v3359_v62, 0.0 }
 0x44d   :  { %v2956_v6 = vpop.f32.mrb[2].mxu0 }
 0x44e   :  { %v7489_v17 = vadd.f32 %v2956_v6, %v2093_v53  ;;  %v2958_v54 = vpop.f32.mrb[3].mxu0 }
 0x44f   :  { %v7491_v63 = vadd.f32 %v2958_v54, %v2097_v1 }
 0x450   :  { %v3265_v26 = vrot.slane %v7489_v17, 4  ;;  %v3287_v48 = vmul.f32 %v7489_v17, %v7489_v17 }
 0x451   :  { %v3271_v3 = vrot.slane %v7491_v63, 4  ;;  %v3288_v43 = vmul.f32 %v7491_v63, %v7491_v63 }
 0x452   :  { %v3266_v56 = vadd.f32 %v7489_v17, %v3265_v26  ;;  %v3314_v4 = vrot.slane %v3287_v48, 4  ;;  %v3374_v26 = vadd.f32 1e-05, %v3366_v32 }
 0x453   :  { %v3272_v5 = vadd.f32 %v7491_v63, %v3271_v3  ;;  %v3320_v8 = vrot.slane %v3288_v43, 4 }
 0x454   :  { %v3267_v34 = vrot.slane %v3266_v56, 2  ;;  %v3315_v10 = vadd.f32 %v3314_v4, %v3287_v48  ;;  %6680 = vrsqrt.f32 %v3374_v26  ;;  %v4330_v26 = vld [vmem:[#allocation17 + $0xf0] sm:$0xff]  }
 0x455   :  { %v3273_v13 = vrot.slane %v3272_v5, 2  ;;  %v3321_v14 = vadd.f32 %v3320_v8, %v3288_v43 }
 0x456   :  { %v3268_v18 = vadd.f32 %v3267_v34, %v3266_v56  ;;  %v3316_v21 = vrot.slane %v3315_v10, 2 }
 0x457   :  { %v3274_v27 = vadd.f32 %v3273_v13, %v3272_v5  ;;  %v3322_v61 = vrot.slane %v3321_v14, 2  ;;  %v3367_v13 = vld [vmem:[#allocation14] sm:$0xff] }
 0x458   :  { %v3269_v28 = vrot.slane %v3268_v18, 1  ;;  %v3317_v30 = vadd.f32 %v3316_v21, %v3315_v10  ;;  %v3439_v21 = vsub.f32 %v7416_v20, %v7444_v55 }
 0x459   :  { %v3275_v35 = vrot.slane %v3274_v27, 1  ;;  %v3323_v2 = vadd.f32 %v3322_v61, %v3321_v14 }
 0x45a   :  { %v3270_v37 = vadd.f32 %v3269_v28, %v3268_v18  ;;  %v3318_v41 = vrot.slane %v3317_v30, 1  ;;  %v7514_v18 = vld [vmem:[#allocation16] sm:$0xff]  ;;  %v3440_v28 = vsub.f32 %v7420_v36, %v7448_v19 }
 0x45b   :  { %v3276_v16 = vadd.f32 %v3275_v35, %v3274_v27  ;;  %v3324_v44 = vrot.slane %v3323_v2, 1  ;;  %v3445_v27 = vsub.f32 %v7473_v40, %v7496_v0  ;;  %v3518_v45 = vrot.slane %v7514_v18, %v7244_v60 }
 0x45c   :  { %v3319_v29 = vadd.f32 %v3318_v41, %v3317_v30  ;;  %v3336_v51 = vmul.f32 0.125, %v3270_v37  ;;  %v3442_v30 = vsub.f32 %v7425_v57, %v7456_v22  ;;  %v3494_v46 = vrot.slane %v7514_v18, %v7196_v23 }
 0x45d   :  { %v3325_v59 = vadd.f32 %v3324_v44, %v3323_v2  ;;  %v3337_v11 = vmul.f32 0.125, %v3276_v16  ;;  %v3506_v20 = vrot.slane %v7514_v18, %v7215_v33  ;;  %v3510_v0 = vrot.slane %v7514_v18, %v7224_v38 }
 0x45e   :  { %v3343_v15 = vmul.f32 0.125, %v3319_v29  ;;  %v3350_v53 = vmul.f32 %v3336_v51, %v3336_v51  ;;  %v3443_v1 = vsub.f32 %v7489_v17, %v3336_v51  ;;  %v6681_v4 = vpop.eup %6680 }
 0x45f   :  { %v3344_v7 = vmul.f32 0.125, %v3325_v59  ;;  %v3351_v58 = vmul.f32 %v3337_v11, %v3337_v11  ;;  %v3444_v6 = vsub.f32 %v7491_v63, %v3337_v11  ;;  %v3419_v17 = vrot.slane %v6681_v4, %v7305_v52 }
 0x460   :  { %v3357_v54 = vsub.f32 %v3343_v15, %v3350_v53  ;;  %v4325_v15 = vld [vmem:[#allocation17 + $0xc8] sm:$0xff]   ;;  %v4327_v53 = vld [vmem:[#allocation17 + $0xd8] sm:$0xff]  }
 0x461   :  { %v3358_v48 = vsub.f32 %v3344_v7, %v3351_v58  ;;  %v4328_v7 = vld [vmem:[#allocation17 + $0xe0] sm:$0xff]  }
 0x462   :  { %v3364_v24 = vmax.f32 %v3357_v54, 0.0  ;;  %v4320_v58 = vld [vmem:[#allocation17 + $0xa0] sm:$0xff]   ;;  %v4321_v54 = vld [vmem:[#allocation17 + $0xa8] sm:$0xff]  }
 0x463   :  { %v3365_v3 = vmax.f32 %v3358_v48, 0.0  ;;  %v4322_v48 = vld [vmem:[#allocation17 + $0xb0] sm:$0xff]  }
 0x464   :  { %v3372_v43 = vadd.f32 1e-05, %v3364_v24  ;;  %v3502_v24 = vrot.slane %v7514_v18, %v7210_v31 }
 0x465   :  { %v3373_v56 = vadd.f32 1e-05, %v3365_v3  ;;  %v4331_v3 = vld [vmem:[#allocation17 + $0xf8] sm:$0xff]  }
 0x466   :  { %6682 = vrsqrt.f32 %v3372_v43  ;;  %v3514_v43 = vrot.slane %v7514_v18, %v7230_v42 }
 0x467   :  { %6684 = vrsqrt.f32 %v3373_v56  ;;  %v4323_v56 = vld [vmem:[#allocation17 + $0xb8] sm:$0xff]  }
 0x470   :  { %v6683_v5 = vpop.eup %6682 }
 0x471   :  { %v6685_v8 = vpop.eup %6684 }
 0x472   :  { %v3391_v34 = vcombine.low %v6683_v5, %v6685_v8  ;;  %v4340_v5 = vld [vmem:[#allocation17 + $0x140] sm:$0xff]  }
 0x474   :  { %v3412_v10 = vrot.slane %v3391_v34, %v7305_v52 }
 0x476   :  { %v3421_v12 = vcombine.low %v3412_v10, %v3419_v17  ;;  %v4332_v17 = vld [vmem:[#allocation17 + $0x100] sm:$0xff]  }
 0x478   :  { %v3435_v63 = vrot.slane %v3421_v12, %v7305_v52  ;;  %v3498_v52 = vrot.slane %v7514_v18, %v7201_v25  ;;  %v4341_v12 = vld [vmem:[#allocation17 + $0x148] sm:$0xff]   ;;  %v4336_v18 = vld [vmem:[#allocation17 + $0x120] sm:$0xff]  }
 0x47a   :  { %v3436_v14 = vcombine.low %v3428_v9, %v3435_v63  ;;  %v4342_v63 = vld [vmem:[#allocation17 + $0x150] sm:$0xff]   ;;  %v4343_v9 = vld [vmem:[#allocation17 + $0x158] sm:$0xff]  }
 0x47c   :  { %v3438_v61 = vmul.f32 %v3436_v14, %v3367_v13  ;;  %v4335_v13 = vld [vmem:[#allocation17 + $0x118] sm:$0xff]   ;;  %v4344_v14 = vld [vmem:[#allocation17 + $0x160] sm:$0xff]  }
 0x47e   :  { %v3454_v55 = vrot.slane %v3438_v61, %v7201_v25  ;;  %v3474_v47 = vrot.slane %v3438_v61, %v7244_v60  ;;  %v3450_v36 = vrot.slane %v3438_v61, %v7196_v23  ;;  %v3462_v57 = vrot.slane %v3438_v61, %v7215_v33 }
 0x47f   :  { %v3458_v19 = vrot.slane %v3438_v61, %v7210_v31  ;;  %v3470_v22 = vrot.slane %v3438_v61, %v7230_v42  ;;  %v3466_v40 = vrot.slane %v3438_v61, %v7224_v38  ;;  %v4316_v38 = vld [vmem:[#allocation17 + $0x80] sm:$0xff]   ;;  %v4333_v31 = vld [vmem:[#allocation17 + $0x108] sm:$0xff]   ;;  %v4334_v42 = vld [vmem:[#allocation17 + $0x110] sm:$0xff]  }
 0x480   :  { %v3483_v62 = vmul.f32 %v3454_v55, %v3440_v28  ;;  %v3488_v35 = vmul.f32 %v3474_v47, %v3445_v27  ;;  %v3482_v2 = vmul.f32 %v3450_v36, %v3439_v21  ;;  %v3485_v37 = vmul.f32 %v3462_v57, %v3442_v30  ;;  %v4345_v21 = vld [vmem:[#allocation17 + $0x168] sm:$0xff]   ;;  %v4346_v61 = vld [vmem:[#allocation17 + $0x170] sm:$0xff]   ;;  %v4347_v30 = vld [vmem:[#allocation17 + $0x178] sm:$0xff]  }
 0x481   :  { %v3484_v25 = vmul.f32 %v3458_v19, %v3441_v39  ;;  %v3487_v23 = vmul.f32 %v3470_v22, %v3444_v6  ;;  %v3486_v60 = vmul.f32 %v3466_v40, %v3443_v1  ;;  %v4318_v39 = vld [vmem:[#allocation17 + $0x90] sm:$0xff]   ;;  %v4319_v1 = vld [vmem:[#allocation17 + $0x98] sm:$0xff]   ;;  %v4329_v6 = vld [vmem:[#allocation17 + $0xe8] sm:$0xff]  }
 0x482   :  { %v3527_v33 = vadd.f32 %v3498_v52, %v3483_v62  ;;  %v3532_v41 = vadd.f32 %v3518_v45, %v3488_v35  ;;  %v3526_v16 = vadd.f32 %v3494_v46, %v3482_v2  ;;  %v3529_v44 = vadd.f32 %v3506_v20, %v3485_v37  ;;  %v4337_v27 = vld [vmem:[#allocation17 + $0x128] sm:$0xff]   ;;  %v4338_v28 = vld [vmem:[#allocation17 + $0x130] sm:$0xff]   ;;  %v4339_v52 = vld [vmem:[#allocation17 + $0x138] sm:$0xff]  }
 0x483   :  { %v7544_v29 = vadd.f32 %v3510_v0, %v3486_v60  ;;  %v3528_v4 = vadd.f32 %v3502_v24, %v3484_v25  ;;  %v3531_v8 = vadd.f32 %v3514_v43, %v3487_v23  ;;  %v4076_v57 = vld [vmem:[#allocation19] ss:$0 sm:$0xff] }
 0x484   :  { %v3534_v51 = vmax.f32 %v3527_v33, 0.0  ;;  %v3539_v32 = vmax.f32 %v3532_v41, 0.0  ;;  %v3533_v59 = vmax.f32 %v3526_v16, 0.0  ;;  %v3536_v11 = vmax.f32 %v3529_v44, 0.0 }
 0x485   :  { %v3535_v34 = vmax.f32 %v3528_v4, 0.0  ;;  %v3538_v10 = vmax.f32 %v3531_v8, 0.0  ;;  %v3537_v45 = vmax.f32 %v7544_v29, 0.0 }
 0x486   :  { %3835 = vmatprep.mubr.f32.mxu1 %v3534_v51  ;;  %4684 = vmatmul.mubr.f32.vlgmr.msra.gmra.mrb[4].mxu0 %v3539_v32 }
 0x487   :  { %3836 = vmatmul.mubr.f32.vlgmr.msra.gmra.mrb[18].mxu1 %v3533_v59 }
 0x488   :  { %5543 = vmatpush3.bf16.msra.mxu1 %v4316_v38  ;;  %3905 = vmatprep.mubr.f32.mxu1 %v3536_v11 }
 0x489   :  { %5545 = vmatprep.subr.bf16.mxu1 %v4325_v15 }
 0x48c   :  { %5547 = vmatpush3.bf16.msra.mxu1 %v4317_v50 }
 0x48d   :  { %5549 = vmatprep.subr.bf16.mxu1 %v4326_v49 }
 0x490   :  { %5551 = vmatpush3.bf16.msra.mxu1 %v4318_v39 }
 0x491   :  { %5553 = vmatprep.subr.bf16.mxu1 %v4327_v53 }
 0x494   :  { %5555 = vmatpush3.bf16.msra.mxu1 %v4319_v1 }
 0x495   :  { %5557 = vmatprep.subr.bf16.mxu1 %v4328_v7 }
 0x498   :  { %5559 = vmatpush3.bf16.msra.mxu1 %v4320_v58 }
 0x499   :  { %5561 = vmatprep.subr.bf16.mxu1 %v4329_v6 }
 0x49c   :  { %5563 = vmatpush3.bf16.msra.mxu1 %v4321_v54 }
 0x49d   :  { %5565 = vmatprep.subr.bf16.mxu1 %v4330_v26 }
 0x4a0   :  { %5567 = vmatpush3.bf16.msra.mxu1 %v4322_v48 }
 0x4a1   :  { %5569 = vmatprep.subr.bf16.mxu1 %v4331_v3 }
 0x4a4   :  { %5571 = vmatpush3.bf16.msra.mxu1 %v4323_v56 }
 0x4a5   :  { %5573 = vmatprep.subr.bf16.mxu1 %v4340_v5 }
 0x4a7   :  { %3906 = vmatmul.mubr.f32.vlgmr.msra.gmra.mrb[20].mxu1 %v3535_v34 }
 0x4a8   :  { %5575 = vmatpush3.bf16.msra.mxu1 %v4332_v17  ;;  %3975 = vmatprep.mubr.f32.mxu1 %v3538_v10 }
 0x4a9   :  { %5577 = vmatprep.subr.bf16.mxu1 %v4341_v12 }
 0x4ac   :  { %5579 = vmatpush3.bf16.msra.mxu1 %v4333_v31 }
 0x4ad   :  { %5581 = vmatprep.subr.bf16.mxu1 %v4342_v63 }
 0x4b0   :  { %5583 = vmatpush3.bf16.msra.mxu1 %v4334_v42 }
 0x4b1   :  { %5585 = vmatprep.subr.bf16.mxu1 %v4343_v9 }
 0x4b4   :  { %5587 = vmatpush3.bf16.msra.mxu1 %v4335_v13 }
 0x4b5   :  { %5589 = vmatprep.subr.bf16.mxu1 %v4344_v14 }
 0x4b8   :  { %5591 = vmatpush3.bf16.msra.mxu1 %v4336_v18 }
 0x4b9   :  { %5593 = vmatprep.subr.bf16.mxu1 %v4345_v21 }
 0x4bc   :  { %5595 = vmatpush3.bf16.msra.mxu1 %v4337_v27 }
 0x4bd   :  { %5597 = vmatprep.subr.bf16.mxu1 %v4346_v61 }
 0x4c0   :  { %5599 = vmatpush3.bf16.msra.mxu1 %v4338_v28 }
 0x4c1   :  { %5601 = vmatprep.subr.bf16.mxu1 %v4347_v30 }
 0x4c4   :  { %5603 = vmatpush3.bf16.msra.mxu1 %v4339_v52 }
 0x4c7   :  { %3976 = vmatmul.mubr.f32.vlgmr.msra.gmra.mrb[22].mxu1 %v3537_v45 }
 0x559   :  { %v4047_v46 = vpop.f32.mrb[4].mxu0 }
 0x55a   :  { %v4515_v20 = vpop.f32.mrb[18].mxu1  ;;  %v4685_v55 = vpop.f32.mrb[5].mxu0 }
 0x55b   :  { %v4516_v47 = vpop.f32.mrb[19].mxu1 }
 0x55c   :  { %v4517_v36 = vadd.f32 %v4516_v47, %v4515_v20 }
 0x55e   :  { %v3838_v40 = vadd.f32 %v4517_v36, %v4076_v57 }
 0x57a   :  { %v4550_v19 = vpop.f32.mrb[20].mxu1 }
 0x57b   :  { %v4551_v22 = vpop.f32.mrb[21].mxu1 }
 0x57c   :  { %v4552_v0 = vadd.f32 %v4551_v22, %v4550_v19 }
 0x57e   :  { %v3908_v62 = vadd.f32 %v4552_v0, %v3838_v40 }
 0x59a   :  { %v4585_v35 = vpop.f32.mrb[22].mxu1 }
 0x59b   :  { %v4586_v2 = vpop.f32.mrb[23].mxu1 }
 0x59c   :  { %v4587_v37 = vadd.f32 %v4586_v2, %v4585_v35 }
 0x59e   :  { %v3978_v25 = vadd.f32 %v4587_v37, %v3908_v62 }
 0x5a0   :  { %v4048_v23 = vadd.f32 %v4047_v46, %v3978_v25 }
 0x5a2   :  { %4051 = vst [vmem:[#allocation20] sm:$0xff] %v4048_v23 }
 0x5a3   :  { %6939 = shalt.err (!%p6936_p8)
}
 0x5a4   :  { %s6940_s18 = scalar_lea.hbm %s7574_s11, 128 }
 0x5a5   :  { %p6941_p9 = scmp.ne.s32.totalorder %s7574_s11, %s6940_s18  ;;  %p6944_p10 = scmp.lt.u32.totalorder %s6940_s18, %s7574_s11 }
 0x5a7   :  { %p6946_p11 = pnand %p6944_p10, %p6941_p9 }
 0x5a9   :  { %6949 = shalt.err (!%p6946_p11)
}
 0x5aa   :  { %4061 = dma.vmem_to_hbm [thread:$0]  %s4059_s22, 128, %s7574_s11, [#allocation4]  }
 0x5ab   :  { %6962 = dma.done.wait [#allocation4], 128  }
 0x5ac   :  { %6963 = vsyncadd [#allocation4], 4294967168 }
 0x5ad   :  { %4065 = vsyncpa [#allocation3], 1 }
 0x5ae   :  { %4066 = vsyncpa [#allocation6], 1 }
 0x5af   :  { %4067 = vsyncpa [#allocation9], 1 }
 0x5b0   :  { %4068 = vsyncpa [#allocation12], 1 }
 0x5b1   :  { %4069 = vsyncpa [#allocation15], 1 }
 0x5b2   :  { %4070 = vsyncpa [#allocation18], 1 }
 0x5b3   :  { %4071 = vsyncpa [#allocation4], 1 }

</bundles_post_ra>
